<compile_context>
chip_gen: v6e
topology: v6e:2x2x1
jax: 0.10.0
libtpu: 0.0.40
codegen_flags: <defaults>
</compile_context>

<pallas_src>
import functools
import math

import jax
import jax.numpy as jnp
from jax.experimental import pallas as pl
from jax.experimental.pallas import tpu as pltpu


_VMEM_LIMIT = 48 * 1024 * 1024


# ---------------------------------------------------------------------------
# helpers
# ---------------------------------------------------------------------------

def _pick_tile(dim: int, preferred: int, align: int) -> int:
    """Largest tile <= preferred that divides `dim` and is `align`-aligned.

    Falls back to the full dim only when no aligned divisor exists (tiny demo
    shapes); a full-dim block is always legal.
    """
    if dim % preferred == 0:
        return preferred
    t = (min(preferred, dim) // align) * align
    while t >= align:
        if dim % t == 0:
            return t
        t -= align
    return dim


# ---------------------------------------------------------------------------
# fused linear:
#   out = [residual +] act([bias +] [row_scale *] (x @ W.T))
#   x: (M, K), W: (N, K)  (PyTorch nn.Linear layout -- no wrapper transpose)
# MXU runs bf16 x bf16 -> f32 accumulator.
# ---------------------------------------------------------------------------

def _make_linear_kernel(has_scale, has_bias, has_residual, activation):
    def kernel(*refs):
        it = iter(refs)
        x_ref = next(it)
        w_ref = next(it)
        s_ref = next(it) if has_scale else None
        b_ref = next(it) if has_bias else None
        r_ref = next(it) if has_residual else None
        o_ref = next(it)
        acc_ref = next(it)

        k = pl.program_id(2)

        # bf16 MXU path, f32 accumulation.
        prod = jax.lax.dot_general(
            x_ref[...].astype(jnp.bfloat16),
            w_ref[...].astype(jnp.bfloat16),
            dimension_numbers=(((1,), (1,)), ((), ())),
            preferred_element_type=jnp.float32)

        @pl.when(k == 0)
        def _():
            acc_ref[...] = prod          # no zero-fill + "+=" on the first step

        @pl.when(k > 0)
        def _():
            acc_ref[...] += prod

        @pl.when(k == pl.num_programs(2) - 1)
        def _():
            acc = acc_ref[...]
            if has_scale:                # fused rms_norm: per-row inv-rms scale
                acc = acc * s_ref[...]
            if has_bias:
                acc = acc + b_ref[...].astype(jnp.float32)
            if activation == "silu":
                acc = acc * jax.nn.sigmoid(acc)
            if has_residual:
                acc = acc + r_ref[...].astype(jnp.float32)
            o_ref[...] = acc.astype(o_ref.dtype)

    return kernel


def pallas_linear(x, weight, *, x_scale=None, bias=None, activation=None,
                  residual=None, out_dtype=None,
                  tm=512, tn=512, tk=1024):
    M, K = x.shape
    N, K2 = weight.shape
    assert K == K2
    out_dtype = out_dtype or x.dtype
    tm = _pick_tile(M, tm, 8)      # sublane axis of x / out
    tn = _pick_tile(N, tn, 128)    # lane axis of out
    tk = _pick_tile(K, tk, 128)    # lane axis of x / w

    in_specs = [
        pl.BlockSpec((tm, tk), lambda i, j, k: (i, k)),
        pl.BlockSpec((tn, tk), lambda i, j, k: (j, k)),
    ]
    operands = [x, weight]
    if x_scale is not None:
        in_specs.append(pl.BlockSpec((tm, 1), lambda i, j, k: (i, 0)))
        operands.append(x_scale)
    if bias is not None:
        in_specs.append(pl.BlockSpec((1, tn), lambda i, j, k: (0, j)))
        operands.append(bias.reshape(1, N))
    io_aliases = {}
    if residual is not None:
        in_specs.append(pl.BlockSpec((tm, tn), lambda i, j, k: (i, j)))
        operands.append(residual)
        if residual.dtype == out_dtype:
            io_aliases = {len(operands) - 1: 0}   # reuse residual buffer in place

    kernel = _make_linear_kernel(x_scale is not None, bias is not None,
                                 residual is not None, activation)

    return pl.pallas_call(
        kernel,
        out_shape=jax.ShapeDtypeStruct((M, N), out_dtype),
        grid_spec=pltpu.PrefetchScalarGridSpec(
            num_scalar_prefetch=0,
            grid=(M // tm, N // tn, K // tk),
            in_specs=in_specs,
            out_specs=pl.BlockSpec((tm, tn), lambda i, j, k: (i, j)),
            scratch_shapes=[pltpu.VMEM((tm, tn), jnp.float32)],
        ),
        compiler_params=pltpu.CompilerParams(
            dimension_semantics=("parallel", "parallel", "arbitrary"),
            vmem_limit_bytes=_VMEM_LIMIT),
        input_output_aliases=io_aliases,
    )(*operands)


# ---------------------------------------------------------------------------
# rms scale: emit only the per-row 1/rms(x) factor (M, 1); the following GEMM
# multiplies it into its accumulator (equivalent to normalizing x first).
# ---------------------------------------------------------------------------

def _rms_scale_kernel(x_ref, s_ref):
    x = x_ref[...].astype(jnp.float32)
    ms = jnp.mean(x * x, axis=-1, keepdims=True)
    s_ref[...] = jax.lax.rsqrt(ms)


def pallas_rms_scale(x):
    M, E = x.shape
    tm = _pick_tile(M, 512, 8)
    return pl.pallas_call(
        _rms_scale_kernel,
        out_shape=jax.ShapeDtypeStruct((M, 1), jnp.float32),
        grid_spec=pltpu.PrefetchScalarGridSpec(
            num_scalar_prefetch=0,
            grid=(M // tm,),
            in_specs=[pl.BlockSpec((tm, E), lambda i: (i, 0))],
            out_specs=pl.BlockSpec((tm, 1), lambda i: (i, 0)),
        ),
        compiler_params=pltpu.CompilerParams(
            dimension_semantics=("parallel",),
            vmem_limit_bytes=_VMEM_LIMIT),
    )(x)


# ---------------------------------------------------------------------------
# flash attention (non-causal SDPA), grid (B, q_tiles, kv_tiles).
# One grid step processes ALL heads of a (b, q-tile): q/k/v come straight out
# of the packed (B, T, 3E) qkv buffer via column-block index_maps, and the
# output is a lane-dense (tq, E) slab already in "b t (h e)" layout.
# ---------------------------------------------------------------------------

def _flash_attention_kernel(q_ref, k_ref, v_ref, o_ref, m_sc, l_sc, acc_sc,
                            *, heads, scale):
    ki = pl.program_id(2)

    @pl.when(ki == 0)
    def _():
        m_sc[...] = jnp.full(m_sc.shape, -jnp.inf, jnp.float32)
        l_sc[...] = jnp.zeros(l_sc.shape, jnp.float32)
        acc_sc[...] = jnp.zeros(acc_sc.shape, jnp.float32)

    q_all = q_ref[0]                       # (tq, E)
    k_all = k_ref[0]                       # (tk, E)
    v_all = v_ref[0]                       # (tk, E)
    hd = q_all.shape[-1] // heads

    for h in range(heads):                 # static unroll over heads
        sl = slice(h * hd, (h + 1) * hd)
        # fold 1/sqrt(hd) into q once (tq*hd mults instead of tq*tk)
        q = (q_all[:, sl].astype(jnp.float32) * scale).astype(jnp.bfloat16)
        k = k_all[:, sl].astype(jnp.bfloat16)
        v = v_all[:, sl].astype(jnp.bfloat16)

        s = jax.lax.dot_general(q, k, (((1,), (1,)), ((), ())),
                                preferred_element_type=jnp.float32)   # (tq, tk)

        m_prev = m_sc[h]                                              # (tq, 1)
        m_new = jnp.maximum(m_prev, s.max(axis=-1, keepdims=True))
        alpha = jnp.exp(m_prev - m_new)
        p = jnp.exp(s - m_new)
        l_sc[h] = alpha * l_sc[h] + p.sum(axis=-1, keepdims=True)
        acc_sc[:, sl] = alpha * acc_sc[:, sl] + jnp.dot(
            p.astype(jnp.bfloat16), v, preferred_element_type=jnp.float32)
        m_sc[h] = m_new

    @pl.when(ki == pl.num_programs(2) - 1)
    def _():
        pieces = []
        for h in range(heads):
            sl = slice(h * hd, (h + 1) * hd)
            inv = pl.reciprocal(l_sc[h], approx=True)   # EUP slot, ~free
            pieces.append(acc_sc[:, sl] * inv)
        o_ref[0] = jnp.concatenate(pieces, axis=-1).astype(o_ref.dtype)


def pallas_attention(qkv, *, heads):
    """qkv: (B, T, 3*E) packed as (q|k|v), each section ordered (h, hd).
    Returns (B, T, E) in 'b t (h e)' layout."""
    B, T, E3 = qkv.shape
    E = E3 // 3
    hd = E // heads
    scale = 1.0 / math.sqrt(hd)
    tq = _pick_tile(T, 256, 8)
    tk = _pick_tile(T, 512, 8)

    kernel = functools.partial(_flash_attention_kernel, heads=heads, scale=scale)
    scratch = [
        pltpu.VMEM((heads, tq, 1), jnp.float32),   # running max per head
        pltpu.VMEM((heads, tq, 1), jnp.float32),   # running denom per head
        pltpu.VMEM((tq, E), jnp.float32),          # lane-dense accumulator
    ]
    cparams = pltpu.CompilerParams(
        dimension_semantics=("parallel", "parallel", "arbitrary"),
        vmem_limit_bytes=_VMEM_LIMIT)
    out_shape = jax.ShapeDtypeStruct((B, T, E), qkv.dtype)

    if E % 128 == 0:
        # Read q/k/v directly out of the packed buffer: column blocks 0/1/2.
        return pl.pallas_call(
            kernel, out_shape=out_shape,
            grid_spec=pltpu.PrefetchScalarGridSpec(
                num_scalar_prefetch=0,
                grid=(B, T // tq, T // tk),
                in_specs=[
                    pl.BlockSpec((1, tq, E), lambda b, qi, ki: (b, qi, 0)),
                    pl.BlockSpec((1, tk, E), lambda b, qi, ki: (b, ki, 1)),
                    pl.BlockSpec((1, tk, E), lambda b, qi, ki: (b, ki, 2)),
                ],
                out_specs=pl.BlockSpec((1, tq, E), lambda b, qi, ki: (b, qi, 0)),
                scratch_shapes=scratch),
            compiler_params=cparams,
        )(qkv, qkv, qkv)

    # TODO(synk): E not a 128-multiple -- fall back to wrapper-side q/k/v
    # slicing (three small XLA slices) so the BlockSpec last dim stays legal.
    q = qkv[:, :, :E]
    k = qkv[:, :, E:2 * E]
    v = qkv[:, :, 2 * E:]
    return pl.pallas_call(
        kernel, out_shape=out_shape,
        grid_spec=pltpu.PrefetchScalarGridSpec(
            num_scalar_prefetch=0,
            grid=(B, T // tq, T // tk),
            in_specs=[
                pl.BlockSpec((1, tq, E), lambda b, qi, ki: (b, qi, 0)),
                pl.BlockSpec((1, tk, E), lambda b, qi, ki: (b, ki, 0)),
                pl.BlockSpec((1, tk, E), lambda b, qi, ki: (b, ki, 0)),
            ],
            out_specs=pl.BlockSpec((1, tq, E), lambda b, qi, ki: (b, qi, 0)),
            scratch_shapes=scratch),
        compiler_params=cparams,
    )(q, k, v)


# ---------------------------------------------------------------------------
# full transformer forward
# ---------------------------------------------------------------------------

def transformer_forward(x, params, *, heads):
    B, T, E = x.shape
    x2 = x.reshape(B * T, E)                       # residual stream stays f32

    for p in params:
        # Weights streamed in bf16 (halves GEMM HBM traffic); in production
        # they would be stored bf16 once rather than cast per call.
        w_qkv = p["attn_w1"].astype(jnp.bfloat16)
        w_out = p["attn_w2"].astype(jnp.bfloat16)
        w_m1 = p["mlp_w1"].astype(jnp.bfloat16)
        w_m2 = p["mlp_w2"].astype(jnp.bfloat16)

        # --- attention sub-block: x = x + W2 @ SDPA(split(W1 @ rms(x))) ---
        inv_rms = pallas_rms_scale(x2)                              # (M, 1)
        qkv = pallas_linear(x2, w_qkv, x_scale=inv_rms,
                            out_dtype=jnp.bfloat16)                 # (M, 3E)
        o = pallas_attention(qkv.reshape(B, T, 3 * E), heads=heads)  # (B, T, E)
        x2 = pallas_linear(o.reshape(B * T, E), w_out,
                           residual=x2, out_dtype=jnp.float32)      # fused +res

        # --- mlp sub-block: x = x + silu(W2 @ silu(W1 @ rms(x) + b1) + b2) ---
        inv_rms = pallas_rms_scale(x2)
        h = pallas_linear(x2, w_m1, x_scale=inv_rms, bias=p["mlp_b1"],
                          activation="silu", out_dtype=jnp.bfloat16)
        x2 = pallas_linear(h, w_m2, bias=p["mlp_b2"], activation="silu",
                           residual=x2, out_dtype=jnp.float32)

    return x2.reshape(B, T, E)


# ---------------------------------------------------------------------------
# parameters + pure-JAX f32 reference
# ---------------------------------------------------------------------------

def init_transformer_params(key, *, embedding_dimension, blocks):
    E = embedding_dimension
    b_e = 1.0 / math.sqrt(E)
    b_3e = 1.0 / math.sqrt(3 * E)
    params = []
    for _ in range(blocks):
        key, k1, k2, k3, k4, k5, k6 = jax.random.split(key, 7)
        params.append(dict(
            attn_w1=jax.random.uniform(k1, (3 * E, E), jnp.float32, -b_e, b_e),
            attn_w2=jax.random.uniform(k2, (E, E), jnp.float32, -b_e, b_e),
            mlp_w1=jax.random.uniform(k3, (3 * E, E), jnp.float32, -b_e, b_e),
            mlp_b1=jax.random.uniform(k4, (3 * E,), jnp.float32, -b_e, b_e),
            mlp_w2=jax.random.uniform(k5, (E, 3 * E), jnp.float32, -b_3e, b_3e),
            mlp_b2=jax.random.uniform(k6, (E,), jnp.float32, -b_3e, b_3e),
        ))
    return params


def _reference(x, params, *, heads):
    def rms(v):
        return v / jnp.sqrt(jnp.mean(v * v, axis=-1, keepdims=True))

    B, T, E = x.shape
    hd = E // heads
    for p in params:
        h = rms(x)
        qkv = h @ p["attn_w1"].T
        qkv = qkv.reshape(B, T, 3, heads, hd).transpose(2, 0, 3, 1, 4)
        q, k, v = qkv[0], qkv[1], qkv[2]
        s = jnp.einsum("bhqd,bhkd->bhqk", q, k) / math.sqrt(hd)
        a = jax.nn.softmax(s, axis=-1)
        o = jnp.einsum("bhqk,bhkd->bhqd", a, v)
        o = o.transpose(0, 2, 1, 3).reshape(B, T, E)
        x = x + o @ p["attn_w2"].T
        h = rms(x)
        h = jax.nn.silu(h @ p["mlp_w1"].T + p["mlp_b1"])
        x = x + jax.nn.silu(h @ p["mlp_w2"].T + p["mlp_b2"])
    return x


if __name__ == "__main__":
    key = jax.random.PRNGKey(0)
    k_x, k_p = jax.random.split(key)

    B, T, E, HEADS, BLOCKS = 2, 8, 128, 4, 2
    x = jax.random.normal(k_x, (B, T, E), dtype=jnp.float32)
    params = init_transformer_params(k_p, embedding_dimension=E, blocks=BLOCKS)

    fwd = jax.jit(functools.partial(transformer_forward, heads=HEADS))
    out = jax.block_until_ready(fwd(x, params))

    ref = _reference(x, params, heads=HEADS)
    assert out.shape == (B, T, E), out.shape
    # bf16 MXU path vs f32 reference: tolerance loosened accordingly.
    max_err = float(jnp.max(jnp.abs(out - ref)))
    assert jnp.allclose(out, ref, atol=5e-2, rtol=5e-2), max_err

    print("KERNEL_OK")
</pallas_src>

<mosaic_0001>
module attributes {stable_mosaic.version = 11 : i64} {
  func.func @kernel(%arg0: i32, %arg1: i32, %arg2: i32, %arg3: memref<16x128xf32, #tpu.memory_space<vmem>>, %arg4: memref<384x128xbf16, #tpu.memory_space<vmem>>, %arg5: memref<16x1xf32, #tpu.memory_space<vmem>>, %arg6: memref<16x384xbf16, #tpu.memory_space<vmem>>, %arg7: memref<16x384xf32, #tpu.memory_space<vmem>>) attributes {dimension_semantics = [#tpu.dimension_semantics<parallel>, #tpu.dimension_semantics<parallel>, #tpu.dimension_semantics<arbitrary>], iteration_bounds = array<i64: 1, 1, 1>, scalar_prefetch = 0 : i64, scratch_operands = 1 : i64, tpu.core_type = #tpu.core_type<tc>, window_params = [{transform_indices = @transform_0, window_bounds = array<i64: 16, 128>}, {transform_indices = @transform_1, window_bounds = array<i64: 384, 128>}, {transform_indices = @transform_2, window_bounds = array<i64: 16, 1>}, {transform_indices = @transform_3, window_bounds = array<i64: 16, 384>}]} {
    %c0 = arith.constant 0 : index
    %c0_0 = arith.constant 0 : index
    %0 = vector.load %arg3[%c0, %c0_0] : memref<16x128xf32, #tpu.memory_space<vmem>>, vector<16x128xf32>
    %1 = arith.truncf %0 : vector<16x128xf32> to vector<16x128xbf16>
    %c0_1 = arith.constant 0 : index
    %c0_2 = arith.constant 0 : index
    %2 = vector.load %arg4[%c0_1, %c0_2] : memref<384x128xbf16, #tpu.memory_space<vmem>>, vector<384x128xbf16>
    %cst = arith.constant dense<0.000000e+00> : vector<16x384xf32>
    %3 = tpu.matmul %1, %2, %cst {dimension_numbers = #tpu.dot_dimension_numbers<[1], [1], [0], [0], [0, 0, 1, 0], [], []>} : vector<16x128xbf16>, vector<384x128xbf16>, vector<16x384xf32> -> vector<16x384xf32>
    %c0_i32 = arith.constant 0 : i32
    %4 = arith.cmpi eq, %arg2, %c0_i32 : i32
    %5 = arith.extui %4 : i1 to i32
    %c0_i32_3 = arith.constant 0 : i32
    %6 = arith.cmpi ne, %5, %c0_i32_3 : i32
    scf.if %6 {
      %c0_8 = arith.constant 0 : index
      %c0_9 = arith.constant 0 : index
      %13 = vector.load %arg7[%c0_8, %c0_9] : memref<16x384xf32, #tpu.memory_space<vmem>>, vector<16x384xf32>
      tpu.vector_store %arg7[%c0_8, %c0_9], %3 {strides = array<i32>} : memref<16x384xf32, #tpu.memory_space<vmem>>, vector<16x384xf32>,
    } else {
    }
    %c0_i32_4 = arith.constant 0 : i32
    %7 = arith.cmpi sgt, %arg2, %c0_i32_4 : i32
    %8 = arith.extui %7 : i1 to i32
    %c0_i32_5 = arith.constant 0 : i32
    %9 = arith.cmpi ne, %8, %c0_i32_5 : i32
    scf.if %9 {
      %c0_8 = arith.constant 0 : index
      %c0_9 = arith.constant 0 : index
      %13 = vector.load %arg7[%c0_8, %c0_9] : memref<16x384xf32, #tpu.memory_space<vmem>>, vector<16x384xf32>
      %14 = arith.addf %13, %3 : vector<16x384xf32>
      %c0_10 = arith.constant 0 : index
      %c0_11 = arith.constant 0 : index
      %15 = vector.load %arg7[%c0_10, %c0_11] : memref<16x384xf32, #tpu.memory_space<vmem>>, vector<16x384xf32>
      tpu.vector_store %arg7[%c0_10, %c0_11], %14 {strides = array<i32>} : memref<16x384xf32, #tpu.memory_space<vmem>>, vector<16x384xf32>,
    } else {
    }
    %c0_i32_6 = arith.constant 0 : i32
    %10 = arith.cmpi eq, %arg2, %c0_i32_6 : i32
    %11 = arith.extui %10 : i1 to i32
    %c0_i32_7 = arith.constant 0 : i32
    %12 = arith.cmpi ne, %11, %c0_i32_7 : i32
    scf.if %12 {
      %c0_8 = arith.constant 0 : index
      %c0_9 = arith.constant 0 : index
      %13 = vector.load %arg7[%c0_8, %c0_9] : memref<16x384xf32, #tpu.memory_space<vmem>>, vector<16x384xf32>
      %c0_10 = arith.constant 0 : index
      %c0_11 = arith.constant 0 : index
      %14 = vector.load %arg5[%c0_10, %c0_11] : memref<16x1xf32, #tpu.memory_space<vmem>>, vector<16x1xf32>
      %15 = vector.broadcast %14 : vector<16x1xf32> to vector<16x384xf32>
      %16 = arith.mulf %13, %15 : vector<16x384xf32>
      %17 = arith.truncf %16 : vector<16x384xf32> to vector<16x384xbf16>
      %c0_12 = arith.constant 0 : index
      %c0_13 = arith.constant 0 : index
      %18 = vector.load %arg6[%c0_12, %c0_13] : memref<16x384xbf16, #tpu.memory_space<vmem>>, vector<16x384xbf16>
      tpu.vector_store %arg6[%c0_12, %c0_13], %17 {strides = array<i32>} : memref<16x384xbf16, #tpu.memory_space<vmem>>, vector<16x384xbf16>,
    } else {
    }
    return
  }
  func.func @transform_0(%arg0: i32, %arg1: i32, %arg2: i32) -> (i32, i32) {
    %c0_i32 = arith.constant 0 : i32
    return %arg0, %arg2 : i32, i32
  }
  func.func @transform_1(%arg0: i32, %arg1: i32, %arg2: i32) -> (i32, i32) {
    %c0_i32 = arith.constant 0 : i32
    return %arg1, %arg2 : i32, i32
  }
  func.func @transform_2(%arg0: i32, %arg1: i32, %arg2: i32) -> (i32, i32) {
    %c0_i32 = arith.constant 0 : i32
    %c0_i32_0 = arith.constant 0 : i32
    return %arg0, %c0_i32 : i32, i32
  }
  func.func @transform_3(%arg0: i32, %arg1: i32, %arg2: i32) -> (i32, i32) {
    %c0_i32 = arith.constant 0 : i32
    return %arg0, %arg1 : i32, i32
  }
}

module attributes {stable_mosaic.version = 11 : i64} {
  func.func @_rms_scale_kernel(%arg0: i32, %arg1: memref<16x128xf32, #tpu.memory_space<vmem>>, %arg2: memref<16x1xf32, #tpu.memory_space<vmem>>) attributes {dimension_semantics = [#tpu.dimension_semantics<parallel>], iteration_bounds = array<i64: 1>, scalar_prefetch = 0 : i64, scratch_operands = 0 : i64, tpu.core_type = #tpu.core_type<tc>, window_params = [{transform_indices = @transform_0, window_bounds = array<i64: 16, 128>}, {transform_indices = @transform_1, window_bounds = array<i64: 16, 1>}]} {
    %c0 = arith.constant 0 : index
    %c0_0 = arith.constant 0 : index
    %0 = vector.load %arg1[%c0, %c0_0] : memref<16x128xf32, #tpu.memory_space<vmem>>, vector<16x128xf32>
    %1 = arith.mulf %0, %0 : vector<16x128xf32>
    %cst = arith.constant dense<0.000000e+00> : vector<16xf32>
    %2 = vector.multi_reduction <add>, %1, %cst [1] : vector<16x128xf32> to vector<16xf32>
    %3 = vector.shape_cast %2 : vector<16xf32> to vector<16x1xf32>
    %cst_1 = arith.constant 1.280000e+02 : f32
    %4 = vector.broadcast %cst_1 : f32 to vector<16x1xf32>
    %5 = arith.divf %3, %4 : vector<16x1xf32>
    %6 = math.rsqrt %5 : vector<16x1xf32>
    %c0_2 = arith.constant 0 : index
    %c0_3 = arith.constant 0 : index
    %7 = vector.load %arg2[%c0_2, %c0_3] : memref<16x1xf32, #tpu.memory_space<vmem>>, vector<16x1xf32>
    tpu.vector_store %arg2[%c0_2, %c0_3], %6 {strides = array<i32>} : memref<16x1xf32, #tpu.memory_space<vmem>>, vector<16x1xf32>,
    return
  }
  func.func @transform_0(%arg0: i32) -> (i32, i32) {
    %c0_i32 = arith.constant 0 : i32
    %c0_i32_0 = arith.constant 0 : i32
    return %arg0, %c0_i32 : i32, i32
  }
  func.func @transform_1(%arg0: i32) -> (i32, i32) {
    %c0_i32 = arith.constant 0 : i32
    %c0_i32_0 = arith.constant 0 : i32
    return %arg0, %c0_i32 : i32, i32
  }
}

module attributes {stable_mosaic.version = 11 : i64} {
  func.func @_flash_attention_kernel(%arg0: i32, %arg1: i32, %arg2: i32, %arg3: memref<1x8x128xbf16, #tpu.memory_space<vmem>>, %arg4: memref<1x8x128xbf16, #tpu.memory_space<vmem>>, %arg5: memref<1x8x128xbf16, #tpu.memory_space<vmem>>, %arg6: memref<1x8x128xbf16, #tpu.memory_space<vmem>>, %arg7: memref<4x8x1xf32, #tpu.memory_space<vmem>>, %arg8: memref<4x8x1xf32, #tpu.memory_space<vmem>>, %arg9: memref<8x128xf32, #tpu.memory_space<vmem>>) attributes {dimension_semantics = [#tpu.dimension_semantics<parallel>, #tpu.dimension_semantics<parallel>, #tpu.dimension_semantics<arbitrary>], iteration_bounds = array<i64: 2, 1, 1>, scalar_prefetch = 0 : i64, scratch_operands = 3 : i64, tpu.core_type = #tpu.core_type<tc>, window_params = [{transform_indices = @transform_0, window_bounds = array<i64: 1, 8, 128>}, {transform_indices = @transform_1, window_bounds = array<i64: 1, 8, 128>}, {transform_indices = @transform_2, window_bounds = array<i64: 1, 8, 128>}, {transform_indices = @transform_3, window_bounds = array<i64: 1, 8, 128>}]} {
    %c0_i32 = arith.constant 0 : i32
    %0 = arith.cmpi eq, %arg2, %c0_i32 : i32
    %1 = arith.extui %0 : i1 to i32
    %c0_i32_0 = arith.constant 0 : i32
    %2 = arith.cmpi ne, %1, %c0_i32_0 : i32
    scf.if %2 {
      %cst_88 = arith.constant 0xFF800000 : f32
      %160 = vector.broadcast %cst_88 : f32 to vector<4x8x1xf32>
      %c0_89 = arith.constant 0 : index
      %c0_90 = arith.constant 0 : index
      %c0_91 = arith.constant 0 : index
      %161 = vector.load %arg7[%c0_89, %c0_90, %c0_91] : memref<4x8x1xf32, #tpu.memory_space<vmem>>, vector<4x8x1xf32>
      tpu.vector_store %arg7[%c0_89, %c0_90, %c0_91], %160 {strides = array<i32>} : memref<4x8x1xf32, #tpu.memory_space<vmem>>, vector<4x8x1xf32>,
      %cst_92 = arith.constant 0.000000e+00 : f32
      %162 = vector.broadcast %cst_92 : f32 to vector<4x8x1xf32>
      %c0_93 = arith.constant 0 : index
      %c0_94 = arith.constant 0 : index
      %c0_95 = arith.constant 0 : index
      %163 = vector.load %arg8[%c0_93, %c0_94, %c0_95] : memref<4x8x1xf32, #tpu.memory_space<vmem>>, vector<4x8x1xf32>
      tpu.vector_store %arg8[%c0_93, %c0_94, %c0_95], %162 {strides = array<i32>} : memref<4x8x1xf32, #tpu.memory_space<vmem>>, vector<4x8x1xf32>,
      %cst_96 = arith.constant 0.000000e+00 : f32
      %164 = vector.broadcast %cst_96 : f32 to vector<8x128xf32>
      %c0_97 = arith.constant 0 : index
      %c0_98 = arith.constant 0 : index
      %165 = vector.load %arg9[%c0_97, %c0_98] : memref<8x128xf32, #tpu.memory_space<vmem>>, vector<8x128xf32>
      tpu.vector_store %arg9[%c0_97, %c0_98], %164 {strides = array<i32>} : memref<8x128xf32, #tpu.memory_space<vmem>>, vector<8x128xf32>,
    } else {
    }
    %c0 = arith.constant 0 : index
    %c0_1 = arith.constant 0 : index
    %c0_2 = arith.constant 0 : index
    %3 = vector.load %arg3[%c0, %c0_1, %c0_2] : memref<1x8x128xbf16, #tpu.memory_space<vmem>>, vector<1x8x128xbf16>
    %4 = vector.shape_cast %3 : vector<1x8x128xbf16> to vector<8x128xbf16>
    %c0_3 = arith.constant 0 : index
    %c0_4 = arith.constant 0 : index
    %c0_5 = arith.constant 0 : index
    %5 = vector.load %arg4[%c0_3, %c0_4, %c0_5] : memref<1x8x128xbf16, #tpu.memory_space<vmem>>, vector<1x8x128xbf16>
    %6 = vector.shape_cast %5 : vector<1x8x128xbf16> to vector<8x128xbf16>
    %c0_6 = arith.constant 0 : index
    %c0_7 = arith.constant 0 : index
    %c0_8 = arith.constant 0 : index
    %7 = vector.load %arg5[%c0_6, %c0_7, %c0_8] : memref<1x8x128xbf16, #tpu.memory_space<vmem>>, vector<1x8x128xbf16>
    %8 = vector.shape_cast %7 : vector<1x8x128xbf16> to vector<8x128xbf16>
    %9 = vector.extract_strided_slice %4 {offsets = [0, 0], sizes = [8, 32], strides = [1, 1]} : vector<8x128xbf16> to vector<8x32xbf16>
    %10 = arith.extf %9 : vector<8x32xbf16> to vector<8x32xf32>
    %cst = arith.constant 0.176776692 : f32
    %11 = vector.broadcast %cst : f32 to vector<8x32xf32>
    %12 = arith.mulf %10, %11 : vector<8x32xf32>
    %13 = arith.truncf %12 : vector<8x32xf32> to vector<8x32xbf16>
    %14 = vector.extract_strided_slice %6 {offsets = [0, 0], sizes = [8, 32], strides = [1, 1]} : vector<8x128xbf16> to vector<8x32xbf16>
    %15 = vector.extract_strided_slice %8 {offsets = [0, 0], sizes = [8, 32], strides = [1, 1]} : vector<8x128xbf16> to vector<8x32xbf16>
    %cst_9 = arith.constant dense<0.000000e+00> : vector<8x8xf32>
    %16 = tpu.matmul %13, %14, %cst_9 {dimension_numbers = #tpu.dot_dimension_numbers<[1], [1], [0], [0], [0, 0, 1, 0], [], []>} : vector<8x32xbf16>, vector<8x32xbf16>, vector<8x8xf32> -> vector<8x8xf32>
    %c0_10 = arith.constant 0 : index
    %c0_11 = arith.constant 0 : index
    %c0_12 = arith.constant 0 : index
    %17 = vector.load %arg7[%c0_10, %c0_11, %c0_12] : memref<4x8x1xf32, #tpu.memory_space<vmem>>, vector<1x8x1xf32>
    %18 = vector.shape_cast %17 : vector<1x8x1xf32> to vector<8x1xf32>
    %cst_13 = arith.constant dense<0xFF800000> : vector<8xf32>
    %19 = vector.multi_reduction <maximumf>, %16, %cst_13 [1] : vector<8x8xf32> to vector<8xf32>
    %20 = vector.shape_cast %19 : vector<8xf32> to vector<8x1xf32>
    %21 = arith.maximumf %18, %20 : vector<8x1xf32>
    %22 = arith.subf %18, %21 : vector<8x1xf32>
    %23 = math.exp %22 : vector<8x1xf32>
    %24 = vector.broadcast %21 : vector<8x1xf32> to vector<8x8xf32>
    %25 = arith.subf %16, %24 : vector<8x8xf32>
    %26 = math.exp %25 : vector<8x8xf32>
    %c0_14 = arith.constant 0 : index
    %c0_15 = arith.constant 0 : index
    %c0_16 = arith.constant 0 : index
    %27 = vector.load %arg8[%c0_14, %c0_15, %c0_16] : memref<4x8x1xf32, #tpu.memory_space<vmem>>, vector<1x8x1xf32>
    %28 = vector.shape_cast %27 : vector<1x8x1xf32> to vector<8x1xf32>
    %29 = arith.mulf %23, %28 : vector<8x1xf32>
    %cst_17 = arith.constant dense<0.000000e+00> : vector<8xf32>
    %30 = vector.multi_reduction <add>, %26, %cst_17 [1] : vector<8x8xf32> to vector<8xf32>
    %31 = vector.shape_cast %30 : vector<8xf32> to vector<8x1xf32>
    %32 = arith.addf %29, %31 : vector<8x1xf32>
    %c0_18 = arith.constant 0 : index
    %c0_19 = arith.constant 0 : index
    %c0_20 = arith.constant 0 : index
    %33 = vector.load %arg8[%c0_18, %c0_19, %c0_20] : memref<4x8x1xf32, #tpu.memory_space<vmem>>, vector<1x8x1xf32>
    %34 = vector.shape_cast %33 : vector<1x8x1xf32> to vector<8x1xf32>
    %35 = vector.shape_cast %32 : vector<8x1xf32> to vector<1x8x1xf32>
    tpu.vector_store %arg8[%c0_18, %c0_19, %c0_20], %35 {strides = array<i32>} : memref<4x8x1xf32, #tpu.memory_space<vmem>>, vector<1x8x1xf32>,
    %c0_21 = arith.constant 0 : index
    %c0_22 = arith.constant 0 : index
    %36 = vector.load %arg9[%c0_21, %c0_22] : memref<8x128xf32, #tpu.memory_space<vmem>>, vector<8x32xf32>
    %37 = vector.broadcast %23 : vector<8x1xf32> to vector<8x32xf32>
    %38 = arith.mulf %37, %36 : vector<8x32xf32>
    %39 = arith.truncf %26 : vector<8x8xf32> to vector<8x8xbf16>
    %cst_23 = arith.constant dense<0.000000e+00> : vector<8x32xf32>
    %40 = tpu.matmul %39, %15, %cst_23 {dimension_numbers = #tpu.dot_dimension_numbers<[1], [0], [0], [1], [0, 0, 1, 1], [], []>} : vector<8x8xbf16>, vector<8x32xbf16>, vector<8x32xf32> -> vector<8x32xf32>
    %41 = arith.addf %38, %40 : vector<8x32xf32>
    %c0_24 = arith.constant 0 : index
    %c0_25 = arith.constant 0 : index
    %42 = vector.load %arg9[%c0_24, %c0_25] : memref<8x128xf32, #tpu.memory_space<vmem>>, vector<8x32xf32>
    tpu.vector_store %arg9[%c0_24, %c0_25], %41 {strides = array<i32>} : memref<8x128xf32, #tpu.memory_space<vmem>>, vector<8x32xf32>,
    %c0_26 = arith.constant 0 : index
    %c0_27 = arith.constant 0 : index
    %c0_28 = arith.constant 0 : index
    %43 = vector.load %arg7[%c0_26, %c0_27, %c0_28] : memref<4x8x1xf32, #tpu.memory_space<vmem>>, vector<1x8x1xf32>
    %44 = vector.shape_cast %43 : vector<1x8x1xf32> to vector<8x1xf32>
    %45 = vector.shape_cast %21 : vector<8x1xf32> to vector<1x8x1xf32>
    tpu.vector_store %arg7[%c0_26, %c0_27, %c0_28], %45 {strides = array<i32>} : memref<4x8x1xf32, #tpu.memory_space<vmem>>, vector<1x8x1xf32>,
    %46 = vector.extract_strided_slice %4 {offsets = [0, 32], sizes = [8, 32], strides = [1, 1]} : vector<8x128xbf16> to vector<8x32xbf16>
    %47 = arith.extf %46 : vector<8x32xbf16> to vector<8x32xf32>
    %cst_29 = arith.constant 0.176776692 : f32
    %48 = vector.broadcast %cst_29 : f32 to vector<8x32xf32>
    %49 = arith.mulf %47, %48 : vector<8x32xf32>
    %50 = arith.truncf %49 : vector<8x32xf32> to vector<8x32xbf16>
    %51 = vector.extract_strided_slice %6 {offsets = [0, 32], sizes = [8, 32], strides = [1, 1]} : vector<8x128xbf16> to vector<8x32xbf16>
    %52 = vector.extract_strided_slice %8 {offsets = [0, 32], sizes = [8, 32], strides = [1, 1]} : vector<8x128xbf16> to vector<8x32xbf16>
    %cst_30 = arith.constant dense<0.000000e+00> : vector<8x8xf32>
    %53 = tpu.matmul %50, %51, %cst_30 {dimension_numbers = #tpu.dot_dimension_numbers<[1], [1], [0], [0], [0, 0, 1, 0], [], []>} : vector<8x32xbf16>, vector<8x32xbf16>, vector<8x8xf32> -> vector<8x8xf32>
    %c1 = arith.constant 1 : index
    %c0_31 = arith.constant 0 : index
    %c0_32 = arith.constant 0 : index
    %54 = vector.load %arg7[%c1, %c0_31, %c0_32] : memref<4x8x1xf32, #tpu.memory_space<vmem>>, vector<1x8x1xf32>
    %55 = vector.shape_cast %54 : vector<1x8x1xf32> to vector<8x1xf32>
    %cst_33 = arith.constant dense<0xFF800000> : vector<8xf32>
    %56 = vector.multi_reduction <maximumf>, %53, %cst_33 [1] : vector<8x8xf32> to vector<8xf32>
    %57 = vector.shape_cast %56 : vector<8xf32> to vector<8x1xf32>
    %58 = arith.maximumf %55, %57 : vector<8x1xf32>
    %59 = arith.subf %55, %58 : vector<8x1xf32>
    %60 = math.exp %59 : vector<8x1xf32>
    %61 = vector.broadcast %58 : vector<8x1xf32> to vector<8x8xf32>
    %62 = arith.subf %53, %61 : vector<8x8xf32>
    %63 = math.exp %62 : vector<8x8xf32>
    %c1_34 = arith.constant 1 : index
    %c0_35 = arith.constant 0 : index
    %c0_36 = arith.constant 0 : index
    %64 = vector.load %arg8[%c1_34, %c0_35, %c0_36] : memref<4x8x1xf32, #tpu.memory_space<vmem>>, vector<1x8x1xf32>
    %65 = vector.shape_cast %64 : vector<1x8x1xf32> to vector<8x1xf32>
    %66 = arith.mulf %60, %65 : vector<8x1xf32>
    %cst_37 = arith.constant dense<0.000000e+00> : vector<8xf32>
    %67 = vector.multi_reduction <add>, %63, %cst_37 [1] : vector<8x8xf32> to vector<8xf32>
    %68 = vector.shape_cast %67 : vector<8xf32> to vector<8x1xf32>
    %69 = arith.addf %66, %68 : vector<8x1xf32>
    %c1_38 = arith.constant 1 : index
    %c0_39 = arith.constant 0 : index
    %c0_40 = arith.constant 0 : index
    %70 = vector.load %arg8[%c1_38, %c0_39, %c0_40] : memref<4x8x1xf32, #tpu.memory_space<vmem>>, vector<1x8x1xf32>
    %71 = vector.shape_cast %70 : vector<1x8x1xf32> to vector<8x1xf32>
    %72 = vector.shape_cast %69 : vector<8x1xf32> to vector<1x8x1xf32>
    tpu.vector_store %arg8[%c1_38, %c0_39, %c0_40], %72 {strides = array<i32>} : memref<4x8x1xf32, #tpu.memory_space<vmem>>, vector<1x8x1xf32>,
    %c0_41 = arith.constant 0 : index
    %c32 = arith.constant 32 : index
    %73 = vector.load %arg9[%c0_41, %c32] : memref<8x128xf32, #tpu.memory_space<vmem>>, vector<8x32xf32>
    %74 = vector.broadcast %60 : vector<8x1xf32> to vector<8x32xf32>
    %75 = arith.mulf %74, %73 : vector<8x32xf32>
    %76 = arith.truncf %63 : vector<8x8xf32> to vector<8x8xbf16>
    %cst_42 = arith.constant dense<0.000000e+00> : vector<8x32xf32>
    %77 = tpu.matmul %76, %52, %cst_42 {dimension_numbers = #tpu.dot_dimension_numbers<[1], [0], [0], [1], [0, 0, 1, 1], [], []>} : vector<8x8xbf16>, vector<8x32xbf16>, vector<8x32xf32> -> vector<8x32xf32>
    %78 = arith.addf %75, %77 : vector<8x32xf32>
    %c0_43 = arith.constant 0 : index
    %c32_44 = arith.constant 32 : index
    %79 = vector.load %arg9[%c0_43, %c32_44] : memref<8x128xf32, #tpu.memory_space<vmem>>, vector<8x32xf32>
    tpu.vector_store %arg9[%c0_43, %c32_44], %78 {strides = array<i32>} : memref<8x128xf32, #tpu.memory_space<vmem>>, vector<8x32xf32>,
    %c1_45 = arith.constant 1 : index
    %c0_46 = arith.constant 0 : index
    %c0_47 = arith.constant 0 : index
    %80 = vector.load %arg7[%c1_45, %c0_46, %c0_47] : memref<4x8x1xf32, #tpu.memory_space<vmem>>, vector<1x8x1xf32>
    %81 = vector.shape_cast %80 : vector<1x8x1xf32> to vector<8x1xf32>
    %82 = vector.shape_cast %58 : vector<8x1xf32> to vector<1x8x1xf32>
    tpu.vector_store %arg7[%c1_45, %c0_46, %c0_47], %82 {strides = array<i32>} : memref<4x8x1xf32, #tpu.memory_space<vmem>>, vector<1x8x1xf32>,
    %83 = vector.extract_strided_slice %4 {offsets = [0, 64], sizes = [8, 32], strides = [1, 1]} : vector<8x128xbf16> to vector<8x32xbf16>
    %84 = arith.extf %83 : vector<8x32xbf16> to vector<8x32xf32>
    %cst_48 = arith.constant 0.176776692 : f32
    %85 = vector.broadcast %cst_48 : f32 to vector<8x32xf32>
    %86 = arith.mulf %84, %85 : vector<8x32xf32>
    %87 = arith.truncf %86 : vector<8x32xf32> to vector<8x32xbf16>
    %88 = vector.extract_strided_slice %6 {offsets = [0, 64], sizes = [8, 32], strides = [1, 1]} : vector<8x128xbf16> to vector<8x32xbf16>
    %89 = vector.extract_strided_slice %8 {offsets = [0, 64], sizes = [8, 32], strides = [1, 1]} : vector<8x128xbf16> to vector<8x32xbf16>
    %cst_49 = arith.constant dense<0.000000e+00> : vector<8x8xf32>
    %90 = tpu.matmul %87, %88, %cst_49 {dimension_numbers = #tpu.dot_dimension_numbers<[1], [1], [0], [0], [0, 0, 1, 0], [], []>} : vector<8x32xbf16>, vector<8x32xbf16>, vector<8x8xf32> -> vector<8x8xf32>
    %c2 = arith.constant 2 : index
    %c0_50 = arith.constant 0 : index
    %c0_51 = arith.constant 0 : index
    %91 = vector.load %arg7[%c2, %c0_50, %c0_51] : memref<4x8x1xf32, #tpu.memory_space<vmem>>, vector<1x8x1xf32>
    %92 = vector.shape_cast %91 : vector<1x8x1xf32> to vector<8x1xf32>
    %cst_52 = arith.constant dense<0xFF800000> : vector<8xf32>
    %93 = vector.multi_reduction <maximumf>, %90, %cst_52 [1] : vector<8x8xf32> to vector<8xf32>
    %94 = vector.shape_cast %93 : vector<8xf32> to vector<8x1xf32>
    %95 = arith.maximumf %92, %94 : vector<8x1xf32>
    %96 = arith.subf %92, %95 : vector<8x1xf32>
    %97 = math.exp %96 : vector<8x1xf32>
    %98 = vector.broadcast %95 : vector<8x1xf32> to vector<8x8xf32>
    %99 = arith.subf %90, %98 : vector<8x8xf32>
    %100 = math.exp %99 : vector<8x8xf32>
    %c2_53 = arith.constant 2 : index
    %c0_54 = arith.constant 0 : index
    %c0_55 = arith.constant 0 : index
    %101 = vector.load %arg8[%c2_53, %c0_54, %c0_55] : memref<4x8x1xf32, #tpu.memory_space<vmem>>, vector<1x8x1xf32>
    %102 = vector.shape_cast %101 : vector<1x8x1xf32> to vector<8x1xf32>
    %103 = arith.mulf %97, %102 : vector<8x1xf32>
    %cst_56 = arith.constant dense<0.000000e+00> : vector<8xf32>
    %104 = vector.multi_reduction <add>, %100, %cst_56 [1] : vector<8x8xf32> to vector<8xf32>
    %105 = vector.shape_cast %104 : vector<8xf32> to vector<8x1xf32>
    %106 = arith.addf %103, %105 : vector<8x1xf32>
    %c2_57 = arith.constant 2 : index
    %c0_58 = arith.constant 0 : index
    %c0_59 = arith.constant 0 : index
    %107 = vector.load %arg8[%c2_57, %c0_58, %c0_59] : memref<4x8x1xf32, #tpu.memory_space<vmem>>, vector<1x8x1xf32>
    %108 = vector.shape_cast %107 : vector<1x8x1xf32> to vector<8x1xf32>
    %109 = vector.shape_cast %106 : vector<8x1xf32> to vector<1x8x1xf32>
    tpu.vector_store %arg8[%c2_57, %c0_58, %c0_59], %109 {strides = array<i32>} : memref<4x8x1xf32, #tpu.memory_space<vmem>>, vector<1x8x1xf32>,
    %c0_60 = arith.constant 0 : index
    %c64 = arith.constant 64 : index
    %110 = vector.load %arg9[%c0_60, %c64] : memref<8x128xf32, #tpu.memory_space<vmem>>, vector<8x32xf32>
    %111 = vector.broadcast %97 : vector<8x1xf32> to vector<8x32xf32>
    %112 = arith.mulf %111, %110 : vector<8x32xf32>
    %113 = arith.truncf %100 : vector<8x8xf32> to vector<8x8xbf16>
    %cst_61 = arith.constant dense<0.000000e+00> : vector<8x32xf32>
    %114 = tpu.matmul %113, %89, %cst_61 {dimension_numbers = #tpu.dot_dimension_numbers<[1], [0], [0], [1], [0, 0, 1, 1], [], []>} : vector<8x8xbf16>, vector<8x32xbf16>, vector<8x32xf32> -> vector<8x32xf32>
    %115 = arith.addf %112, %114 : vector<8x32xf32>
    %c0_62 = arith.constant 0 : index
    %c64_63 = arith.constant 64 : index
    %116 = vector.load %arg9[%c0_62, %c64_63] : memref<8x128xf32, #tpu.memory_space<vmem>>, vector<8x32xf32>
    tpu.vector_store %arg9[%c0_62, %c64_63], %115 {strides = array<i32>} : memref<8x128xf32, #tpu.memory_space<vmem>>, vector<8x32xf32>,
    %c2_64 = arith.constant 2 : index
    %c0_65 = arith.constant 0 : index
    %c0_66 = arith.constant 0 : index
    %117 = vector.load %arg7[%c2_64, %c0_65, %c0_66] : memref<4x8x1xf32, #tpu.memory_space<vmem>>, vector<1x8x1xf32>
    %118 = vector.shape_cast %117 : vector<1x8x1xf32> to vector<8x1xf32>
    %119 = vector.shape_cast %95 : vector<8x1xf32> to vector<1x8x1xf32>
    tpu.vector_store %arg7[%c2_64, %c0_65, %c0_66], %119 {strides = array<i32>} : memref<4x8x1xf32, #tpu.memory_space<vmem>>, vector<1x8x1xf32>,
    %120 = vector.extract_strided_slice %4 {offsets = [0, 96], sizes = [8, 32], strides = [1, 1]} : vector<8x128xbf16> to vector<8x32xbf16>
    %121 = arith.extf %120 : vector<8x32xbf16> to vector<8x32xf32>
    %cst_67 = arith.constant 0.176776692 : f32
    %122 = vector.broadcast %cst_67 : f32 to vector<8x32xf32>
    %123 = arith.mulf %121, %122 : vector<8x32xf32>
    %124 = arith.truncf %123 : vector<8x32xf32> to vector<8x32xbf16>
    %125 = vector.extract_strided_slice %6 {offsets = [0, 96], sizes = [8, 32], strides = [1, 1]} : vector<8x128xbf16> to vector<8x32xbf16>
    %126 = vector.extract_strided_slice %8 {offsets = [0, 96], sizes = [8, 32], strides = [1, 1]} : vector<8x128xbf16> to vector<8x32xbf16>
    %cst_68 = arith.constant dense<0.000000e+00> : vector<8x8xf32>
    %127 = tpu.matmul %124, %125, %cst_68 {dimension_numbers = #tpu.dot_dimension_numbers<[1], [1], [0], [0], [0, 0, 1, 0], [], []>} : vector<8x32xbf16>, vector<8x32xbf16>, vector<8x8xf32> -> vector<8x8xf32>
    %c3 = arith.constant 3 : index
    %c0_69 = arith.constant 0 : index
    %c0_70 = arith.constant 0 : index
    %128 = vector.load %arg7[%c3, %c0_69, %c0_70] : memref<4x8x1xf32, #tpu.memory_space<vmem>>, vector<1x8x1xf32>
    %129 = vector.shape_cast %128 : vector<1x8x1xf32> to vector<8x1xf32>
    %cst_71 = arith.constant dense<0xFF800000> : vector<8xf32>
    %130 = vector.multi_reduction <maximumf>, %127, %cst_71 [1] : vector<8x8xf32> to vector<8xf32>
    %131 = vector.shape_cast %130 : vector<8xf32> to vector<8x1xf32>
    %132 = arith.maximumf %129, %131 : vector<8x1xf32>
    %133 = arith.subf %129, %132 : vector<8x1xf32>
    %134 = math.exp %133 : vector<8x1xf32>
    %135 = vector.broadcast %132 : vector<8x1xf32> to vector<8x8xf32>
    %136 = arith.subf %127, %135 : vector<8x8xf32>
    %137 = math.exp %136 : vector<8x8xf32>
    %c3_72 = arith.constant 3 : index
    %c0_73 = arith.constant 0 : index
    %c0_74 = arith.constant 0 : index
    %138 = vector.load %arg8[%c3_72, %c0_73, %c0_74] : memref<4x8x1xf32, #tpu.memory_space<vmem>>, vector<1x8x1xf32>
    %139 = vector.shape_cast %138 : vector<1x8x1xf32> to vector<8x1xf32>
    %140 = arith.mulf %134, %139 : vector<8x1xf32>
    %cst_75 = arith.constant dense<0.000000e+00> : vector<8xf32>
    %141 = vector.multi_reduction <add>, %137, %cst_75 [1] : vector<8x8xf32> to vector<8xf32>
    %142 = vector.shape_cast %141 : vector<8xf32> to vector<8x1xf32>
    %143 = arith.addf %140, %142 : vector<8x1xf32>
    %c3_76 = arith.constant 3 : index
    %c0_77 = arith.constant 0 : index
    %c0_78 = arith.constant 0 : index
    %144 = vector.load %arg8[%c3_76, %c0_77, %c0_78] : memref<4x8x1xf32, #tpu.memory_space<vmem>>, vector<1x8x1xf32>
    %145 = vector.shape_cast %144 : vector<1x8x1xf32> to vector<8x1xf32>
    %146 = vector.shape_cast %143 : vector<8x1xf32> to vector<1x8x1xf32>
    tpu.vector_store %arg8[%c3_76, %c0_77, %c0_78], %146 {strides = array<i32>} : memref<4x8x1xf32, #tpu.memory_space<vmem>>, vector<1x8x1xf32>,
    %c0_79 = arith.constant 0 : index
    %c96 = arith.constant 96 : index
    %147 = vector.load %arg9[%c0_79, %c96] : memref<8x128xf32, #tpu.memory_space<vmem>>, vector<8x32xf32>
    %148 = vector.broadcast %134 : vector<8x1xf32> to vector<8x32xf32>
    %149 = arith.mulf %148, %147 : vector<8x32xf32>
    %150 = arith.truncf %137 : vector<8x8xf32> to vector<8x8xbf16>
    %cst_80 = arith.constant dense<0.000000e+00> : vector<8x32xf32>
    %151 = tpu.matmul %150, %126, %cst_80 {dimension_numbers = #tpu.dot_dimension_numbers<[1], [0], [0], [1], [0, 0, 1, 1], [], []>} : vector<8x8xbf16>, vector<8x32xbf16>, vector<8x32xf32> -> vector<8x32xf32>
    %152 = arith.addf %149, %151 : vector<8x32xf32>
    %c0_81 = arith.constant 0 : index
    %c96_82 = arith.constant 96 : index
    %153 = vector.load %arg9[%c0_81, %c96_82] : memref<8x128xf32, #tpu.memory_space<vmem>>, vector<8x32xf32>
    tpu.vector_store %arg9[%c0_81, %c96_82], %152 {strides = array<i32>} : memref<8x128xf32, #tpu.memory_space<vmem>>, vector<8x32xf32>,
    %c3_83 = arith.constant 3 : index
    %c0_84 = arith.constant 0 : index
    %c0_85 = arith.constant 0 : index
    %154 = vector.load %arg7[%c3_83, %c0_84, %c0_85] : memref<4x8x1xf32, #tpu.memory_space<vmem>>, vector<1x8x1xf32>
    %155 = vector.shape_cast %154 : vector<1x8x1xf32> to vector<8x1xf32>
    %156 = vector.shape_cast %132 : vector<8x1xf32> to vector<1x8x1xf32>
    tpu.vector_store %arg7[%c3_83, %c0_84, %c0_85], %156 {strides = array<i32>} : memref<4x8x1xf32, #tpu.memory_space<vmem>>, vector<1x8x1xf32>,
    %c0_i32_86 = arith.constant 0 : i32
    %157 = arith.cmpi eq, %arg2, %c0_i32_86 : i32
    %158 = arith.extui %157 : i1 to i32
    %c0_i32_87 = arith.constant 0 : i32
    %159 = arith.cmpi ne, %158, %c0_i32_87 : i32
    scf.if %159 {
      %c0_88 = arith.constant 0 : index
      %c0_89 = arith.constant 0 : index
      %c0_90 = arith.constant 0 : index
      %160 = vector.load %arg8[%c0_88, %c0_89, %c0_90] : memref<4x8x1xf32, #tpu.memory_space<vmem>>, vector<1x8x1xf32>
      %161 = vector.shape_cast %160 : vector<1x8x1xf32> to vector<8x1xf32>
      %162 = tpu.reciprocal %161 {approx = true} : vector<8x1xf32> -> vector<8x1xf32>
      %c0_91 = arith.constant 0 : index
      %c0_92 = arith.constant 0 : index
      %163 = vector.load %arg9[%c0_91, %c0_92] : memref<8x128xf32, #tpu.memory_space<vmem>>, vector<8x32xf32>
      %164 = vector.broadcast %162 : vector<8x1xf32> to vector<8x32xf32>
      %165 = arith.mulf %163, %164 : vector<8x32xf32>
      %c1_93 = arith.constant 1 : index
      %c0_94 = arith.constant 0 : index
      %c0_95 = arith.constant 0 : index
      %166 = vector.load %arg8[%c1_93, %c0_94, %c0_95] : memref<4x8x1xf32, #tpu.memory_space<vmem>>, vector<1x8x1xf32>
      %167 = vector.shape_cast %166 : vector<1x8x1xf32> to vector<8x1xf32>
      %168 = tpu.reciprocal %167 {approx = true} : vector<8x1xf32> -> vector<8x1xf32>
      %c0_96 = arith.constant 0 : index
      %c32_97 = arith.constant 32 : index
      %169 = vector.load %arg9[%c0_96, %c32_97] : memref<8x128xf32, #tpu.memory_space<vmem>>, vector<8x32xf32>
      %170 = vector.broadcast %168 : vector<8x1xf32> to vector<8x32xf32>
      %171 = arith.mulf %169, %170 : vector<8x32xf32>
      %c2_98 = arith.constant 2 : index
      %c0_99 = arith.constant 0 : index
      %c0_100 = arith.constant 0 : index
      %172 = vector.load %arg8[%c2_98, %c0_99, %c0_100] : memref<4x8x1xf32, #tpu.memory_space<vmem>>, vector<1x8x1xf32>
      %173 = vector.shape_cast %172 : vector<1x8x1xf32> to vector<8x1xf32>
      %174 = tpu.reciprocal %173 {approx = true} : vector<8x1xf32> -> vector<8x1xf32>
      %c0_101 = arith.constant 0 : index
      %c64_102 = arith.constant 64 : index
      %175 = vector.load %arg9[%c0_101, %c64_102] : memref<8x128xf32, #tpu.memory_space<vmem>>, vector<8x32xf32>
      %176 = vector.broadcast %174 : vector<8x1xf32> to vector<8x32xf32>
      %177 = arith.mulf %175, %176 : vector<8x32xf32>
      %c3_103 = arith.constant 3 : index
      %c0_104 = arith.constant 0 : index
      %c0_105 = arith.constant 0 : index
      %178 = vector.load %arg8[%c3_103, %c0_104, %c0_105] : memref<4x8x1xf32, #tpu.memory_space<vmem>>, vector<1x8x1xf32>
      %179 = vector.shape_cast %178 : vector<1x8x1xf32> to vector<8x1xf32>
      %180 = tpu.reciprocal %179 {approx = true} : vector<8x1xf32> -> vector<8x1xf32>
      %c0_106 = arith.constant 0 : index
      %c96_107 = arith.constant 96 : index
      %181 = vector.load %arg9[%c0_106, %c96_107] : memref<8x128xf32, #tpu.memory_space<vmem>>, vector<8x32xf32>
      %182 = vector.broadcast %180 : vector<8x1xf32> to vector<8x32xf32>
      %183 = arith.mulf %181, %182 : vector<8x32xf32>
      %184 = tpu.concatenate %165, %171, %177, %183 in 1 : vector<8x32xf32>, vector<8x32xf32>, vector<8x32xf32>, vector<8x32xf32> -> vector<8x128xf32>
      %185 = arith.truncf %184 : vector<8x128xf32> to vector<8x128xbf16>
      %c0_108 = arith.constant 0 : index
      %c0_109 = arith.constant 0 : index
      %c0_110 = arith.constant 0 : index
      %186 = vector.load %arg6[%c0_108, %c0_109, %c0_110] : memref<1x8x128xbf16, #tpu.memory_space<vmem>>, vector<1x8x128xbf16>
      %187 = vector.shape_cast %186 : vector<1x8x128xbf16> to vector<8x128xbf16>
      %188 = vector.shape_cast %185 : vector<8x128xbf16> to vector<1x8x128xbf16>
      tpu.vector_store %arg6[%c0_108, %c0_109, %c0_110], %188 {strides = array<i32>} : memref<1x8x128xbf16, #tpu.memory_space<vmem>>, vector<1x8x128xbf16>,
    } else {
    }
    return
  }
  func.func @transform_0(%arg0: i32, %arg1: i32, %arg2: i32) -> (i32, i32, i32) {
    %c0_i32 = arith.constant 0 : i32
    %c0_i32_0 = arith.constant 0 : i32
    return %arg0, %arg1, %c0_i32 : i32, i32, i32
  }
  func.func @transform_1(%arg0: i32, %arg1: i32, %arg2: i32) -> (i32, i32, i32) {
    %c1_i32 = arith.constant 1 : i32
    %c0_i32 = arith.constant 0 : i32
    return %arg0, %arg2, %c1_i32 : i32, i32, i32
  }
  func.func @transform_2(%arg0: i32, %arg1: i32, %arg2: i32) -> (i32, i32, i32) {
    %c2_i32 = arith.constant 2 : i32
    %c0_i32 = arith.constant 0 : i32
    return %arg0, %arg2, %c2_i32 : i32, i32, i32
  }
  func.func @transform_3(%arg0: i32, %arg1: i32, %arg2: i32) -> (i32, i32, i32) {
    %c0_i32 = arith.constant 0 : i32
    %c0_i32_0 = arith.constant 0 : i32
    return %arg0, %arg1, %c0_i32 : i32, i32, i32
  }
}

module attributes {stable_mosaic.version = 11 : i64} {
  func.func @kernel(%arg0: i32, %arg1: i32, %arg2: i32, %arg3: memref<16x128xbf16, #tpu.memory_space<vmem>>, %arg4: memref<128x128xbf16, #tpu.memory_space<vmem>>, %arg5: memref<16x128xf32, #tpu.memory_space<vmem>>, %arg6: memref<16x128xf32, #tpu.memory_space<vmem>>, %arg7: memref<16x128xf32, #tpu.memory_space<vmem>>) attributes {dimension_semantics = [#tpu.dimension_semantics<parallel>, #tpu.dimension_semantics<parallel>, #tpu.dimension_semantics<arbitrary>], iteration_bounds = array<i64: 1, 1, 1>, scalar_prefetch = 0 : i64, scratch_operands = 1 : i64, tpu.core_type = #tpu.core_type<tc>, window_params = [{transform_indices = @transform_0, window_bounds = array<i64: 16, 128>}, {transform_indices = @transform_1, window_bounds = array<i64: 128, 128>}, {transform_indices = @transform_2, window_bounds = array<i64: 16, 128>}, {transform_indices = @transform_3, window_bounds = array<i64: 16, 128>}]} {
    %c0 = arith.constant 0 : index
    %c0_0 = arith.constant 0 : index
    %0 = vector.load %arg3[%c0, %c0_0] : memref<16x128xbf16, #tpu.memory_space<vmem>>, vector<16x128xbf16>
    %c0_1 = arith.constant 0 : index
    %c0_2 = arith.constant 0 : index
    %1 = vector.load %arg4[%c0_1, %c0_2] : memref<128x128xbf16, #tpu.memory_space<vmem>>, vector<128x128xbf16>
    %cst = arith.constant dense<0.000000e+00> : vector<16x128xf32>
    %2 = tpu.matmul %0, %1, %cst {dimension_numbers = #tpu.dot_dimension_numbers<[1], [1], [0], [0], [0, 0, 1, 0], [], []>} : vector<16x128xbf16>, vector<128x128xbf16>, vector<16x128xf32> -> vector<16x128xf32>
    %c0_i32 = arith.constant 0 : i32
    %3 = arith.cmpi eq, %arg2, %c0_i32 : i32
    %4 = arith.extui %3 : i1 to i32
    %c0_i32_3 = arith.constant 0 : i32
    %5 = arith.cmpi ne, %4, %c0_i32_3 : i32
    scf.if %5 {
      %c0_8 = arith.constant 0 : index
      %c0_9 = arith.constant 0 : index
      %12 = vector.load %arg7[%c0_8, %c0_9] : memref<16x128xf32, #tpu.memory_space<vmem>>, vector<16x128xf32>
      tpu.vector_store %arg7[%c0_8, %c0_9], %2 {strides = array<i32>} : memref<16x128xf32, #tpu.memory_space<vmem>>, vector<16x128xf32>,
    } else {
    }
    %c0_i32_4 = arith.constant 0 : i32
    %6 = arith.cmpi sgt, %arg2, %c0_i32_4 : i32
    %7 = arith.extui %6 : i1 to i32
    %c0_i32_5 = arith.constant 0 : i32
    %8 = arith.cmpi ne, %7, %c0_i32_5 : i32
    scf.if %8 {
      %c0_8 = arith.constant 0 : index
      %c0_9 = arith.constant 0 : index
      %12 = vector.load %arg7[%c0_8, %c0_9] : memref<16x128xf32, #tpu.memory_space<vmem>>, vector<16x128xf32>
      %13 = arith.addf %12, %2 : vector<16x128xf32>
      %c0_10 = arith.constant 0 : index
      %c0_11 = arith.constant 0 : index
      %14 = vector.load %arg7[%c0_10, %c0_11] : memref<16x128xf32, #tpu.memory_space<vmem>>, vector<16x128xf32>
      tpu.vector_store %arg7[%c0_10, %c0_11], %13 {strides = array<i32>} : memref<16x128xf32, #tpu.memory_space<vmem>>, vector<16x128xf32>,
    } else {
    }
    %c0_i32_6 = arith.constant 0 : i32
    %9 = arith.cmpi eq, %arg2, %c0_i32_6 : i32
    %10 = arith.extui %9 : i1 to i32
    %c0_i32_7 = arith.constant 0 : i32
    %11 = arith.cmpi ne, %10, %c0_i32_7 : i32
    scf.if %11 {
      %c0_8 = arith.constant 0 : index
      %c0_9 = arith.constant 0 : index
      %12 = vector.load %arg7[%c0_8, %c0_9] : memref<16x128xf32, #tpu.memory_space<vmem>>, vector<16x128xf32>
      %c0_10 = arith.constant 0 : index
      %c0_11 = arith.constant 0 : index
      %13 = vector.load %arg5[%c0_10, %c0_11] : memref<16x128xf32, #tpu.memory_space<vmem>>, vector<16x128xf32>
      %14 = arith.addf %12, %13 : vector<16x128xf32>
      %c0_12 = arith.constant 0 : index
      %c0_13 = arith.constant 0 : index
      %15 = vector.load %arg6[%c0_12, %c0_13] : memref<16x128xf32, #tpu.memory_space<vmem>>, vector<16x128xf32>
      tpu.vector_store %arg6[%c0_12, %c0_13], %14 {strides = array<i32>} : memref<16x128xf32, #tpu.memory_space<vmem>>, vector<16x128xf32>,
    } else {
    }
    return
  }
  func.func @transform_0(%arg0: i32, %arg1: i32, %arg2: i32) -> (i32, i32) {
    %c0_i32 = arith.constant 0 : i32
    return %arg0, %arg2 : i32, i32
  }
  func.func @transform_1(%arg0: i32, %arg1: i32, %arg2: i32) -> (i32, i32) {
    %c0_i32 = arith.constant 0 : i32
    return %arg1, %arg2 : i32, i32
  }
  func.func @transform_2(%arg0: i32, %arg1: i32, %arg2: i32) -> (i32, i32) {
    %c0_i32 = arith.constant 0 : i32
    return %arg0, %arg1 : i32, i32
  }
  func.func @transform_3(%arg0: i32, %arg1: i32, %arg2: i32) -> (i32, i32) {
    %c0_i32 = arith.constant 0 : i32
    return %arg0, %arg1 : i32, i32
  }
}

module attributes {stable_mosaic.version = 11 : i64} {
  func.func @kernel(%arg0: i32, %arg1: i32, %arg2: i32, %arg3: memref<16x128xf32, #tpu.memory_space<vmem>>, %arg4: memref<384x128xbf16, #tpu.memory_space<vmem>>, %arg5: memref<16x1xf32, #tpu.memory_space<vmem>>, %arg6: memref<1x384xf32, #tpu.memory_space<vmem>>, %arg7: memref<16x384xbf16, #tpu.memory_space<vmem>>, %arg8: memref<16x384xf32, #tpu.memory_space<vmem>>) attributes {dimension_semantics = [#tpu.dimension_semantics<parallel>, #tpu.dimension_semantics<parallel>, #tpu.dimension_semantics<arbitrary>], iteration_bounds = array<i64: 1, 1, 1>, scalar_prefetch = 0 : i64, scratch_operands = 1 : i64, tpu.core_type = #tpu.core_type<tc>, window_params = [{transform_indices = @transform_0, window_bounds = array<i64: 16, 128>}, {transform_indices = @transform_1, window_bounds = array<i64: 384, 128>}, {transform_indices = @transform_2, window_bounds = array<i64: 16, 1>}, {transform_indices = @transform_3, window_bounds = array<i64: 1, 384>}, {transform_indices = @transform_4, window_bounds = array<i64: 16, 384>}]} {
    %c0 = arith.constant 0 : index
    %c0_0 = arith.constant 0 : index
    %0 = vector.load %arg3[%c0, %c0_0] : memref<16x128xf32, #tpu.memory_space<vmem>>, vector<16x128xf32>
    %1 = arith.truncf %0 : vector<16x128xf32> to vector<16x128xbf16>
    %c0_1 = arith.constant 0 : index
    %c0_2 = arith.constant 0 : index
    %2 = vector.load %arg4[%c0_1, %c0_2] : memref<384x128xbf16, #tpu.memory_space<vmem>>, vector<384x128xbf16>
    %cst = arith.constant dense<0.000000e+00> : vector<16x384xf32>
    %3 = tpu.matmul %1, %2, %cst {dimension_numbers = #tpu.dot_dimension_numbers<[1], [1], [0], [0], [0, 0, 1, 0], [], []>} : vector<16x128xbf16>, vector<384x128xbf16>, vector<16x384xf32> -> vector<16x384xf32>
    %c0_i32 = arith.constant 0 : i32
    %4 = arith.cmpi eq, %arg2, %c0_i32 : i32
    %5 = arith.extui %4 : i1 to i32
    %c0_i32_3 = arith.constant 0 : i32
    %6 = arith.cmpi ne, %5, %c0_i32_3 : i32
    scf.if %6 {
      %c0_8 = arith.constant 0 : index
      %c0_9 = arith.constant 0 : index
      %13 = vector.load %arg8[%c0_8, %c0_9] : memref<16x384xf32, #tpu.memory_space<vmem>>, vector<16x384xf32>
      tpu.vector_store %arg8[%c0_8, %c0_9], %3 {strides = array<i32>} : memref<16x384xf32, #tpu.memory_space<vmem>>, vector<16x384xf32>,
    } else {
    }
    %c0_i32_4 = arith.constant 0 : i32
    %7 = arith.cmpi sgt, %arg2, %c0_i32_4 : i32
    %8 = arith.extui %7 : i1 to i32
    %c0_i32_5 = arith.constant 0 : i32
    %9 = arith.cmpi ne, %8, %c0_i32_5 : i32
    scf.if %9 {
      %c0_8 = arith.constant 0 : index
      %c0_9 = arith.constant 0 : index
      %13 = vector.load %arg8[%c0_8, %c0_9] : memref<16x384xf32, #tpu.memory_space<vmem>>, vector<16x384xf32>
      %14 = arith.addf %13, %3 : vector<16x384xf32>
      %c0_10 = arith.constant 0 : index
      %c0_11 = arith.constant 0 : index
      %15 = vector.load %arg8[%c0_10, %c0_11] : memref<16x384xf32, #tpu.memory_space<vmem>>, vector<16x384xf32>
      tpu.vector_store %arg8[%c0_10, %c0_11], %14 {strides = array<i32>} : memref<16x384xf32, #tpu.memory_space<vmem>>, vector<16x384xf32>,
    } else {
    }
    %c0_i32_6 = arith.constant 0 : i32
    %10 = arith.cmpi eq, %arg2, %c0_i32_6 : i32
    %11 = arith.extui %10 : i1 to i32
    %c0_i32_7 = arith.constant 0 : i32
    %12 = arith.cmpi ne, %11, %c0_i32_7 : i32
    scf.if %12 {
      %c0_8 = arith.constant 0 : index
      %c0_9 = arith.constant 0 : index
      %13 = vector.load %arg8[%c0_8, %c0_9] : memref<16x384xf32, #tpu.memory_space<vmem>>, vector<16x384xf32>
      %c0_10 = arith.constant 0 : index
      %c0_11 = arith.constant 0 : index
      %14 = vector.load %arg5[%c0_10, %c0_11] : memref<16x1xf32, #tpu.memory_space<vmem>>, vector<16x1xf32>
      %15 = vector.broadcast %14 : vector<16x1xf32> to vector<16x384xf32>
      %16 = arith.mulf %13, %15 : vector<16x384xf32>
      %c0_12 = arith.constant 0 : index
      %c0_13 = arith.constant 0 : index
      %17 = vector.load %arg6[%c0_12, %c0_13] : memref<1x384xf32, #tpu.memory_space<vmem>>, vector<1x384xf32>
      %18 = vector.broadcast %17 : vector<1x384xf32> to vector<16x384xf32>
      %19 = arith.addf %16, %18 : vector<16x384xf32>
      %20 = arith.negf %19 : vector<16x384xf32>
      %21 = math.exp %20 : vector<16x384xf32>
      %cst_14 = arith.constant 1.000000e+00 : f32
      %22 = vector.broadcast %cst_14 : f32 to vector<16x384xf32>
      %23 = arith.addf %22, %21 : vector<16x384xf32>
      %24 = arith.divf %22, %23 : vector<16x384xf32>
      %25 = arith.mulf %19, %24 : vector<16x384xf32>
      %26 = arith.truncf %25 : vector<16x384xf32> to vector<16x384xbf16>
      %c0_15 = arith.constant 0 : index
      %c0_16 = arith.constant 0 : index
      %27 = vector.load %arg7[%c0_15, %c0_16] : memref<16x384xbf16, #tpu.memory_space<vmem>>, vector<16x384xbf16>
      tpu.vector_store %arg7[%c0_15, %c0_16], %26 {strides = array<i32>} : memref<16x384xbf16, #tpu.memory_space<vmem>>, vector<16x384xbf16>,
    } else {
    }
    return
  }
  func.func @transform_0(%arg0: i32, %arg1: i32, %arg2: i32) -> (i32, i32) {
    %c0_i32 = arith.constant 0 : i32
    return %arg0, %arg2 : i32, i32
  }
  func.func @transform_1(%arg0: i32, %arg1: i32, %arg2: i32) -> (i32, i32) {
    %c0_i32 = arith.constant 0 : i32
    return %arg1, %arg2 : i32, i32
  }
  func.func @transform_2(%arg0: i32, %arg1: i32, %arg2: i32) -> (i32, i32) {
    %c0_i32 = arith.constant 0 : i32
    %c0_i32_0 = arith.constant 0 : i32
    return %arg0, %c0_i32 : i32, i32
  }
  func.func @transform_3(%arg0: i32, %arg1: i32, %arg2: i32) -> (i32, i32) {
    %c0_i32 = arith.constant 0 : i32
    %c0_i32_0 = arith.constant 0 : i32
    return %c0_i32, %arg1 : i32, i32
  }
  func.func @transform_4(%arg0: i32, %arg1: i32, %arg2: i32) -> (i32, i32) {
    %c0_i32 = arith.constant 0 : i32
    return %arg0, %arg1 : i32, i32
  }
}

module attributes {stable_mosaic.version = 11 : i64} {
  func.func @kernel(%arg0: i32, %arg1: i32, %arg2: i32, %arg3: memref<16x384xbf16, #tpu.memory_space<vmem>>, %arg4: memref<128x384xbf16, #tpu.memory_space<vmem>>, %arg5: memref<1x128xf32, #tpu.memory_space<vmem>>, %arg6: memref<16x128xf32, #tpu.memory_space<vmem>>, %arg7: memref<16x128xf32, #tpu.memory_space<vmem>>, %arg8: memref<16x128xf32, #tpu.memory_space<vmem>>) attributes {dimension_semantics = [#tpu.dimension_semantics<parallel>, #tpu.dimension_semantics<parallel>, #tpu.dimension_semantics<arbitrary>], iteration_bounds = array<i64: 1, 1, 1>, scalar_prefetch = 0 : i64, scratch_operands = 1 : i64, tpu.core_type = #tpu.core_type<tc>, window_params = [{transform_indices = @transform_0, window_bounds = array<i64: 16, 384>}, {transform_indices = @transform_1, window_bounds = array<i64: 128, 384>}, {transform_indices = @transform_2, window_bounds = array<i64: 1, 128>}, {transform_indices = @transform_3, window_bounds = array<i64: 16, 128>}, {transform_indices = @transform_4, window_bounds = array<i64: 16, 128>}]} {
    %c0 = arith.constant 0 : index
    %c0_0 = arith.constant 0 : index
    %0 = vector.load %arg3[%c0, %c0_0] : memref<16x384xbf16, #tpu.memory_space<vmem>>, vector<16x384xbf16>
    %c0_1 = arith.constant 0 : index
    %c0_2 = arith.constant 0 : index
    %1 = vector.load %arg4[%c0_1, %c0_2] : memref<128x384xbf16, #tpu.memory_space<vmem>>, vector<128x384xbf16>
    %cst = arith.constant dense<0.000000e+00> : vector<16x128xf32>
    %2 = tpu.matmul %0, %1, %cst {dimension_numbers = #tpu.dot_dimension_numbers<[1], [1], [0], [0], [0, 0, 1, 0], [], []>} : vector<16x384xbf16>, vector<128x384xbf16>, vector<16x128xf32> -> vector<16x128xf32>
    %c0_i32 = arith.constant 0 : i32
    %3 = arith.cmpi eq, %arg2, %c0_i32 : i32
    %4 = arith.extui %3 : i1 to i32
    %c0_i32_3 = arith.constant 0 : i32
    %5 = arith.cmpi ne, %4, %c0_i32_3 : i32
    scf.if %5 {
      %c0_8 = arith.constant 0 : index
      %c0_9 = arith.constant 0 : index
      %12 = vector.load %arg8[%c0_8, %c0_9] : memref<16x128xf32, #tpu.memory_space<vmem>>, vector<16x128xf32>
      tpu.vector_store %arg8[%c0_8, %c0_9], %2 {strides = array<i32>} : memref<16x128xf32, #tpu.memory_space<vmem>>, vector<16x128xf32>,
    } else {
    }
    %c0_i32_4 = arith.constant 0 : i32
    %6 = arith.cmpi sgt, %arg2, %c0_i32_4 : i32
    %7 = arith.extui %6 : i1 to i32
    %c0_i32_5 = arith.constant 0 : i32
    %8 = arith.cmpi ne, %7, %c0_i32_5 : i32
    scf.if %8 {
      %c0_8 = arith.constant 0 : index
      %c0_9 = arith.constant 0 : index
      %12 = vector.load %arg8[%c0_8, %c0_9] : memref<16x128xf32, #tpu.memory_space<vmem>>, vector<16x128xf32>
      %13 = arith.addf %12, %2 : vector<16x128xf32>
      %c0_10 = arith.constant 0 : index
      %c0_11 = arith.constant 0 : index
      %14 = vector.load %arg8[%c0_10, %c0_11] : memref<16x128xf32, #tpu.memory_space<vmem>>, vector<16x128xf32>
      tpu.vector_store %arg8[%c0_10, %c0_11], %13 {strides = array<i32>} : memref<16x128xf32, #tpu.memory_space<vmem>>, vector<16x128xf32>,
    } else {
    }
    %c0_i32_6 = arith.constant 0 : i32
    %9 = arith.cmpi eq, %arg2, %c0_i32_6 : i32
    %10 = arith.extui %9 : i1 to i32
    %c0_i32_7 = arith.constant 0 : i32
    %11 = arith.cmpi ne, %10, %c0_i32_7 : i32
    scf.if %11 {
      %c0_8 = arith.constant 0 : index
      %c0_9 = arith.constant 0 : index
      %12 = vector.load %arg8[%c0_8, %c0_9] : memref<16x128xf32, #tpu.memory_space<vmem>>, vector<16x128xf32>
      %c0_10 = arith.constant 0 : index
      %c0_11 = arith.constant 0 : index
      %13 = vector.load %arg5[%c0_10, %c0_11] : memref<1x128xf32, #tpu.memory_space<vmem>>, vector<1x128xf32>
      %14 = vector.broadcast %13 : vector<1x128xf32> to vector<16x128xf32>
      %15 = arith.addf %12, %14 : vector<16x128xf32>
      %16 = arith.negf %15 : vector<16x128xf32>
      %17 = math.exp %16 : vector<16x128xf32>
      %cst_12 = arith.constant 1.000000e+00 : f32
      %18 = vector.broadcast %cst_12 : f32 to vector<16x128xf32>
      %19 = arith.addf %18, %17 : vector<16x128xf32>
      %20 = arith.divf %18, %19 : vector<16x128xf32>
      %21 = arith.mulf %15, %20 : vector<16x128xf32>
      %c0_13 = arith.constant 0 : index
      %c0_14 = arith.constant 0 : index
      %22 = vector.load %arg6[%c0_13, %c0_14] : memref<16x128xf32, #tpu.memory_space<vmem>>, vector<16x128xf32>
      %23 = arith.addf %21, %22 : vector<16x128xf32>
      %c0_15 = arith.constant 0 : index
      %c0_16 = arith.constant 0 : index
      %24 = vector.load %arg7[%c0_15, %c0_16] : memref<16x128xf32, #tpu.memory_space<vmem>>, vector<16x128xf32>
      tpu.vector_store %arg7[%c0_15, %c0_16], %23 {strides = array<i32>} : memref<16x128xf32, #tpu.memory_space<vmem>>, vector<16x128xf32>,
    } else {
    }
    return
  }
  func.func @transform_0(%arg0: i32, %arg1: i32, %arg2: i32) -> (i32, i32) {
    %c0_i32 = arith.constant 0 : i32
    return %arg0, %arg2 : i32, i32
  }
  func.func @transform_1(%arg0: i32, %arg1: i32, %arg2: i32) -> (i32, i32) {
    %c0_i32 = arith.constant 0 : i32
    return %arg1, %arg2 : i32, i32
  }
  func.func @transform_2(%arg0: i32, %arg1: i32, %arg2: i32) -> (i32, i32) {
    %c0_i32 = arith.constant 0 : i32
    %c0_i32_0 = arith.constant 0 : i32
    return %c0_i32, %arg1 : i32, i32
  }
  func.func @transform_3(%arg0: i32, %arg1: i32, %arg2: i32) -> (i32, i32) {
    %c0_i32 = arith.constant 0 : i32
    return %arg0, %arg1 : i32, i32
  }
  func.func @transform_4(%arg0: i32, %arg1: i32, %arg2: i32) -> (i32, i32) {
    %c0_i32 = arith.constant 0 : i32
    return %arg0, %arg1 : i32, i32
  }
}

</mosaic_0001>

<bundles_post_ra>
// kernel: transformer_forward.14
= control target key start
LH: loop header
LB: loop body
LE: loop exit
PB: predicated region body
PF: predicated region fallthrough
CT: control target
= control target key end

     0   :  { %vm21_vm0 = vcmask 7168   ;;  %s54_s0 = inlined_call_operand.vmem [shape: f32[16,128], index: 0, kind: input, shape index: {}]   ;;  %s55_s1 = inlined_call_operand.vmem [shape: f32[16,1], index: 1, kind: output, shape index: {}]  }
   0x1   :  { %v8_v0 = vld [vmem:[%s54_s0] sm:$0xff]  ;;  %v9_v1 = vld [vmem:[%s54_s0 + $0x8] sm:$0xff] }
   0x2   :  { %v10_v2 = vmul.f32 %v8_v0, %v8_v0  ;;  %v11_v3 = vmul.f32 %v9_v1, %v9_v1 }
   0x4   :  { %12 = vadd.xlane.f32.xlu0 %v10_v2 }
   0x8   :  { %14 = vadd.xlane.f32.xlu0 %v11_v3 }
  0x8d   :  { %v13_v4 = vpop.xlane.xlu0 %12 }
  0x8e   :  { %v17_v5 = vmul.f32 0.0078125, %v13_v4 }
  0x90   :  { %28 = vrsqrt.f32 %v17_v5 }
  0x91   :  { %v15_v6 = vpop.xlane.xlu0 %14 }
  0x92   :  { %v18_v7 = vmul.f32 0.0078125, %v15_v6 }
  0x94   :  { %30 = vrsqrt.f32 %v18_v7 }
  0x9d   :  { %v29_v8 = vpop.eup %28 }
  0x9e   :  { %22 = vst.msk [vmem:[%s55_s1] sm:$0xff] %vm21_vm0, %v29_v8 }
  0xa1   :  { %v31_v9 = vpop.eup %30 }
  0xa2   :  { %23 = vst.msk [vmem:[%s55_s1 + $0x8] sm:$0xff] %vm21_vm0, %v31_v9 }

// kernel: transformer_forward.15
= control target key start
LH: loop header
LB: loop body
LE: loop exit
PB: predicated region body
PF: predicated region fallthrough
CT: control target
= control target key end

     0   :  { %v488_v0 = vmov 0.0   ;;  %vm489_vm0 = vmmov 0   ;;  %v490_v3 = vmov 0   ;;  %s616_s1 = inlined_call_operand.vmem [shape: bf16[384,128], index: 1, kind: input, shape index: {}]   ;;  %s617_s0 = inlined_call_operand.vmem [shape: f32[16,128], index: 0, kind: input, shape index: {}]   ;;  %s618_s2 = inlined_call_operand.vmem [shape: f32[16,1], index: 2, kind: input, shape index: {}]   ;;  %s619_s3 = inlined_call_operand.vmem [shape: bf16[16,384], index: 3, kind: output, shape index: {}]  }
   0x1   :  { %440 = vmatprep.subr.bf16.mxu1 %v488_v0  ;;  %v464_v1 = vld [vmem:[%s616_s1 + $0x78] sm:$0xff]   ;;  %456 = vmatprep.mubr.msk.bf16.mxu1 %vm489_vm0, %v488_v0  ;;  %v467_v5 = vld [vmem:[%s616_s1 + $0x70] sm:$0xff]   ;;  %v470_v8 = vld [vmem:[%s616_s1 + $0x68] sm:$0xff]  }
   0x2   :  { %v465_v2 = vld [vmem:[%s616_s1 + $0xb8] sm:$0xff]   ;;  %463 = vset.pattern.permute.xlu0 %v490_v3  ;;  %413 = vmatprep.subr.bf16.mxu0 %v464_v1  ;;  %v468_v6 = vld [vmem:[%s616_s1 + $0xb0] sm:$0xff]   ;;  %v471_v9 = vld [vmem:[%s616_s1 + $0xa8] sm:$0xff]  }
   0x3   :  { %v466_v4 = vld [vmem:[%s616_s1 + $0x38] sm:$0xff]   ;;  %441 = vmatpush3.bf16.xpose.msra.mxu1 %v465_v2  ;;  %v469_v7 = vld [vmem:[%s616_s1 + $0x30] sm:$0xff]   ;;  %v472_v10 = vld [vmem:[%s616_s1 + $0x28] sm:$0xff]  }
   0x4   :  { %414 = vmatpush3.bf16.xpose.msra.mxu0 %v466_v4  ;;  %442 = vmatprep.subr.bf16.mxu1 %v488_v0  ;;  %v473_v11 = vld [vmem:[%s616_s1 + $0x60] sm:$0xff]   ;;  %v16_v15 = vld [vmem:[%s617_s0 + $0x8] sm:$0xff]  ;;  %v476_v17 = vld [vmem:[%s616_s1 + $0x58] sm:$0xff]  }
   0x5   :  { %415 = vmatprep.subr.bf16.mxu0 %v467_v5  ;;  %v474_v12 = vld [vmem:[%s616_s1 + $0xa0] sm:$0xff]   ;;  %v336_v19 = vld [vmem:[%s618_s2 + $0x8] sm:$0xff]  ;;  %v477_v20 = vld [vmem:[%s616_s1 + $0x98] sm:$0xff]  }
   0x6   :  { %v475_v13 = vld [vmem:[%s616_s1 + $0x20] sm:$0xff]   ;;  %v478_v21 = vld [vmem:[%s616_s1 + $0x18] sm:$0xff]   ;;  %v479_v22 = vld [vmem:[%s616_s1 + $0x50] sm:$0xff]  }
   0x7   :  { %v15_v14 = vld [vmem:[%s617_s0] sm:$0xff]  ;;  %v480_v23 = vld [vmem:[%s616_s1 + $0x90] sm:$0xff]   ;;  %v482_v25 = vld [vmem:[%s616_s1 + $0x48] sm:$0xff]  }
   0x8   :  { %v335_v16 = vld [vmem:[%s618_s2] sm:$0xff]  ;;  %v17_v18 = vpack.c.bf16 %v16_v15, %v15_v14  ;;  %v481_v24 = vld [vmem:[%s616_s1 + $0x10] sm:$0xff]   ;;  %v483_v26 = vld [vmem:[%s616_s1 + $0x88] sm:$0xff]  }
   0x9   :  { %339 = vperm.xlu0 %463, %v335_v16   ;;  %v484_v27 = vld [vmem:[%s616_s1 + $0x8] sm:$0xff]   ;;  %v485_v28 = vld [vmem:[%s616_s1 + $0x40] sm:$0xff]  }
   0xa   :  { %429 = vmatprep.mubr.bf16.mxu0 %v17_v18  ;;  %v486_v29 = vld [vmem:[%s616_s1 + $0x80] sm:$0xff]  }
   0xb   :  { %443 = vmatpush3.bf16.xpose.msra.mxu1 %v468_v6  ;;  %v487_v30 = vld [vmem:[%s616_s1] sm:$0xff]  }
   0xc   :  { %416 = vmatpush3.bf16.xpose.msra.mxu0 %v469_v7  ;;  %444 = vmatprep.subr.bf16.mxu1 %v488_v0 }
   0xd   :  { %417 = vmatprep.subr.bf16.mxu0 %v470_v8  ;;  %344 = vperm.xlu0 %463, %v336_v19  }
  0x13   :  { %445 = vmatpush3.bf16.xpose.msra.mxu1 %v471_v9 }
  0x14   :  { %418 = vmatpush3.bf16.xpose.msra.mxu0 %v472_v10  ;;  %446 = vmatprep.subr.bf16.mxu1 %v488_v0 }
  0x15   :  { %419 = vmatprep.subr.bf16.mxu0 %v473_v11 }
  0x1b   :  { %447 = vmatpush3.bf16.xpose.msra.mxu1 %v474_v12 }
  0x1c   :  { %420 = vmatpush3.bf16.xpose.msra.mxu0 %v475_v13  ;;  %448 = vmatprep.subr.bf16.mxu1 %v488_v0 }
  0x1d   :  { %421 = vmatprep.subr.bf16.mxu0 %v476_v17 }
  0x23   :  { %449 = vmatpush3.bf16.xpose.msra.mxu1 %v477_v20 }
  0x24   :  { %422 = vmatpush3.bf16.xpose.msra.mxu0 %v478_v21  ;;  %450 = vmatprep.subr.bf16.mxu1 %v488_v0 }
  0x25   :  { %423 = vmatprep.subr.bf16.mxu0 %v479_v22 }
  0x2b   :  { %451 = vmatpush3.bf16.xpose.msra.mxu1 %v480_v23 }
  0x2c   :  { %424 = vmatpush3.bf16.xpose.msra.mxu0 %v481_v24  ;;  %452 = vmatprep.subr.bf16.mxu1 %v488_v0 }
  0x2d   :  { %425 = vmatprep.subr.bf16.mxu0 %v482_v25 }
  0x33   :  { %453 = vmatpush3.bf16.xpose.msra.mxu1 %v483_v26 }
  0x34   :  { %426 = vmatpush3.bf16.xpose.msra.mxu0 %v484_v27  ;;  %454 = vmatprep.subr.bf16.mxu1 %v488_v0 }
  0x35   :  { %427 = vmatprep.subr.bf16.mxu0 %v485_v28 }
  0x3b   :  { %455 = vmatpush3.bf16.xpose.msra.mxu1 %v486_v29 }
  0x3c   :  { %428 = vmatpush3.bf16.xpose.msra.mxu0 %v487_v30 }
  0x42   :  { %457 = vmatmul.mubr.bf16.vlgmr.msra.gmra.mxu1 %v17_v18 }
  0x43   :  { %430 = vmatmul.mubr.bf16.vlgmr.msra.gmra.mxu0 %v17_v18 }
  0x84   :  { %v340_v31 = vpop.permute.xlu0 %339 }
  0x88   :  { %v345_v36 = vpop.permute.xlu0 %344 }
 0x102   :  { %v287_v32 = vpop.f32.mrf.mxu1 }
 0x103   :  { %v349_v33 = vmul.f32 %v340_v31, %v287_v32  ;;  %v244_v34 = vpop.f32.mrf.mxu0 }
 0x104   :  { %v458_v35 = vpop.f32.mrf.mxu1  ;;  %v347_v39 = vmul.f32 %v340_v31, %v244_v34 }
 0x105   :  { %v410_v37 = vpack.c.bf16 %v349_v33, %v349_v33  ;;  %v246_v38 = vpop.f32.mrf.mxu0 }
 0x106   :  { %v348_v40 = vmul.f32 %v340_v31, %v246_v38  ;;  %v290_v41 = vpop.f32.mrf.mxu1 }
 0x107   :  { %374 = vst [vmem:[%s619_s3 + $0x8] sm:$0xf] %v410_v37  ;;  %v352_v42 = vmul.f32 %v345_v36, %v290_v41  ;;  %v248_v43 = vpop.f32.mrf.mxu0 }
 0x108   :  { %v409_v44 = vpack.c.bf16 %v348_v40, %v347_v39  ;;  %v459_v45 = vpop.f32.mrf.mxu1  ;;  %v350_v48 = vmul.f32 %v345_v36, %v248_v43 }
 0x109   :  { %v412_v46 = vpack.c.bf16 %v352_v42, %v352_v42  ;;  %v250_v47 = vpop.f32.mrf.mxu0 }
 0x10a   :  { %373 = vst [vmem:[%s619_s3] sm:$0xff] %v409_v44  ;;  %v351_v49 = vmul.f32 %v345_v36, %v250_v47 }
 0x10b   :  { %376 = vst [vmem:[%s619_s3 + $0x14] sm:$0xf] %v412_v46 }
 0x10c   :  { %v411_v50 = vpack.c.bf16 %v351_v49, %v350_v48 }
 0x10e   :  { %375 = vst [vmem:[%s619_s3 + $0xc] sm:$0xff] %v411_v50 }

// kernel: transformer_forward.17
= control target key start
LH: loop header
LB: loop body
LE: loop exit
PB: predicated region body
PF: predicated region fallthrough
CT: control target
= control target key end

     0   :  { %v208_v0 = vmov 0.0   ;;  %vm209_vm0 = vmmov 0   ;;  %s269_s1 = inlined_call_operand.vmem [shape: bf16[128,128], index: 1, kind: input, shape index: {}]   ;;  %s270_s0 = inlined_call_operand.vmem [shape: bf16[16,128], index: 0, kind: input, shape index: {}]   ;;  %s271_s2 = inlined_call_operand.vmem [shape: f32[16,128], index: 2, kind: input, shape index: {}, may-alias: {2,3}]   ;;  %s272_s3 = inlined_call_operand.vmem [shape: f32[16,128], index: 3, kind: output, shape index: {}, may-alias: {2,3}]  }
   0x1   :  { %177 = vmatprep.subr.bf16.mxu0 %v208_v0  ;;  %v199_v1 = vld [vmem:[%s269_s1 + $0x38] sm:$0xff]   ;;  %193 = vmatprep.mubr.msk.bf16.mxu0 %vm209_vm0, %v208_v0  ;;  %v200_v2 = vld [vmem:[%s269_s1 + $0x30] sm:$0xff]   ;;  %v201_v3 = vld [vmem:[%s269_s1 + $0x28] sm:$0xff]  }
   0x2   :  { %178 = vmatpush3.bf16.xpose.msra.mxu0 %v199_v1  ;;  %v202_v4 = vld [vmem:[%s269_s1 + $0x20] sm:$0xff]   ;;  %v203_v5 = vld [vmem:[%s269_s1 + $0x18] sm:$0xff]   ;;  %v204_v6 = vld [vmem:[%s269_s1 + $0x10] sm:$0xff]  }
   0x3   :  { %179 = vmatprep.subr.bf16.mxu0 %v208_v0  ;;  %v205_v7 = vld [vmem:[%s269_s1 + $0x8] sm:$0xff]   ;;  %v206_v8 = vld [vmem:[%s269_s1] sm:$0xff]  }
   0x4   :  { %v207_v9 = vld [vmem:[%s270_s0] sm:$0xff]   ;;  %v150_v14 = vld [vmem:[%s271_s2 + $0x8] sm:$0xff] }
   0x5   :  { %v149_v10 = vld [vmem:[%s271_s2] sm:$0xff] }
   0xa   :  { %180 = vmatpush3.bf16.xpose.msra.mxu0 %v200_v2 }
   0xb   :  { %181 = vmatprep.subr.bf16.mxu0 %v208_v0 }
  0x12   :  { %182 = vmatpush3.bf16.xpose.msra.mxu0 %v201_v3 }
  0x13   :  { %183 = vmatprep.subr.bf16.mxu0 %v208_v0 }
  0x1a   :  { %184 = vmatpush3.bf16.xpose.msra.mxu0 %v202_v4 }
  0x1b   :  { %185 = vmatprep.subr.bf16.mxu0 %v208_v0 }
  0x22   :  { %186 = vmatpush3.bf16.xpose.msra.mxu0 %v203_v5 }
  0x23   :  { %187 = vmatprep.subr.bf16.mxu0 %v208_v0 }
  0x2a   :  { %188 = vmatpush3.bf16.xpose.msra.mxu0 %v204_v6 }
  0x2b   :  { %189 = vmatprep.subr.bf16.mxu0 %v208_v0 }
  0x32   :  { %190 = vmatpush3.bf16.xpose.msra.mxu0 %v205_v7 }
  0x33   :  { %191 = vmatprep.subr.bf16.mxu0 %v208_v0 }
  0x3a   :  { %192 = vmatpush3.bf16.xpose.msra.mxu0 %v206_v8 }
  0x41   :  { %194 = vmatmul.mubr.bf16.vlgmr.msra.gmra.mxu0 %v207_v9 }
 0x101   :  { %v121_v11 = vpop.f32.mrf.mxu0 }
 0x102   :  { %v151_v12 = vadd.f32 %v149_v10, %v121_v11 }
 0x103   :  { %v195_v13 = vpop.f32.mrf.mxu0 }
 0x104   :  { %153 = vst [vmem:[%s272_s3] sm:$0xff] %v151_v12 }
 0x105   :  { %v124_v15 = vpop.f32.mrf.mxu0 }
 0x106   :  { %v152_v16 = vadd.f32 %v150_v14, %v124_v15 }
 0x107   :  { %v196_v17 = vpop.f32.mrf.mxu0 }
 0x108   :  { %154 = vst [vmem:[%s272_s3 + $0x8] sm:$0xff] %v152_v16 }

// kernel: transformer_forward.16
= control target key start
LH: loop header
LB: loop body
LE: loop exit
PB: predicated region body
PF: predicated region fallthrough
CT: control target
= control target key end

     0   :  { %s1231_s12 = smov 0   ;;  %s1233_s13 = smov 0   ;;  %s1386_s0 = inlined_call_operand.vmem [shape: bf16[2,8,384], index: 0, kind: input, shape index: {}, may-alias: {0,1,2}]   ;;  %s1387_s1 = inlined_call_operand.vmem [shape: bf16[2,8,384], index: 1, kind: input, shape index: {}, may-alias: {0,1,2}]   ;;  %s1388_s2 = inlined_call_operand.vmem [shape: bf16[2,8,384], index: 2, kind: input, shape index: {}, may-alias: {0,1,2}]   ;;  %s1389_s3 = inlined_call_operand.vmem [shape: bf16[2,8,128], index: 3, kind: output, shape index: {}]  }
   0x1   :  { %s1235_s14 = smov 0  }
   0x2 LB: > { %s32_s15 = sadd.s32 1, %s1198_s13  ;;  %p1037_p0 = scmp.ge.s32.totalorder %s1202_s14, 1  ;;  %s1202_s14 = sphi %s1235_s14, %s13_s14   ;;  %s1198_s13 = sphi %s1233_s13, %s1391_s13   ;;  %s1194_s12 = sphi %s1231_s12, %s1390_s12  }
   0x3   : > { %p34_p1 = scmp.ge.s32.totalorder %s32_s15, 2  ;;  %p198_p2 = scmp.lt.s32.totalorder %s1202_s14, 3 }
   0x5   : > { %s1393_s15 = smov (%p34_p1, %s32_s15), 0  ;;  %p199_p3 = pnand %p1037_p0, %p198_p2 }
   0x6   : > { %p248_p4 = scmp.lt.s32.totalorder (!%p199_p3), %s1194_s12, 1  ;;  %s1208_s23 = smov (!%p199_p3), 96  }
   0x7   : > { %202 = sbr.rel (%p199_p3) target bundleno = 1340 (0x53c), region = 32  ;;  %s1209_s24 = smov (!%p199_p3), 64  }
   0x8   : > { %s1210_s25 = smov (!%p199_p3), 32  }
   0xc   : > { %v1204_v0 = vmov 0.0   ;;  %vm1205_vm0 = vmmov 0   ;;  %s1395_s12 = smov (!%p248_p4, %s1194_s12), 1  ;;  %vm305_vm1 = vcmask 261120   ;;  %vm289_vm2 = vcmask 7168  }
   0xd   : > { %1072 = vmatprep.subr.bf16.mxu0 %v1204_v0  ;;  %298 = vst [vmem:[#allocation4] sm:$0xff] %v1204_v0  ;;  %1074 = vmatprep.mubr.msk.bf16.mxu0 %vm1205_vm0, %v1204_v0  ;;  %s1259_s16 = smul.u32 12, %s1395_s12  ;;  %v1206_v7 = vmov -inf   ;;  %294 = vst.msk [vmem:[#allocation3] sm:$0xff] %vm289_vm2, %v1204_v0  ;;  %vm353_vm3 = vcmask 64512   ;;  %v1207_v13 = vmov 0  }
   0xe   : > { %1078 = vmatprep.subr.bf16.mxu1 %v1204_v0  ;;  %1080 = vmatprep.mubr.msk.bf16.mxu1 %vm1205_vm0, %v1204_v0  ;;  %290 = vst.msk [vmem:[#allocation2] sm:$0xff] %vm289_vm2, %v1206_v7  ;;  %291 = vst.msk [vmem:[#allocation2 + $0x8] sm:$0xff] %vm289_vm2, %v1206_v7  ;;  %vm388_vm4 = vcmask 1043456   ;;  %vm578_vm5 = vcmask 523520   ;;  %vm717_vm6 = vcmask 785920   ;;  %vm856_vm7 = vcmask 1048320  }
   0xf   : > { %s973_s19 = scalar_lea.vmem %s1387_s1, %s1259_s16  ;;  %s256_s22 = scalar_lea.vmem %s1386_s0, %s1259_s16  ;;  %292 = vst.msk [vmem:[#allocation2 + $0x10] sm:$0xff] %vm289_vm2, %v1206_v7  ;;  %293 = vst.msk [vmem:[#allocation2 + $0x18] sm:$0xff] %vm289_vm2, %v1206_v7  ;;  %1152 = vset.pattern.permute.xlu0 %v1207_v13  ;;  %1153 = vset.pattern.permute.xlu1 %v1207_v13  ;;  %vm896_vm8 = vcmask 523264   ;;  %vm898_vm9 = vcmask 785408  }
  0x10   : > { %v1042_v1 = vld [vmem:[%s973_s19 + $0x4] sm:$0xf]  ;;  %v299_v2 = vld [vmem:[%s256_s22] sm:$0xf]  ;;  %295 = vst.msk [vmem:[#allocation3 + $0x8] sm:$0xff] %vm289_vm2, %v1204_v0  ;;  %296 = vst.msk [vmem:[#allocation3 + $0x10] sm:$0xff] %vm289_vm2, %v1204_v0  ;;  %s979_s28 = scalar_lea.vmem %s1388_s2, %s1259_s16 }
  0x11   : > { %v310_v3 = vsel %vm305_vm1, %v1042_v1, 0  ;;  %v302_v4 = vunpack.c.l.bf16 %v299_v2  ;;  %297 = vst.msk [vmem:[#allocation3 + $0x18] sm:$0xff] %vm289_vm2, %v1204_v0  ;;  %v1046_v14 = vcombine.low %v1042_v1, %v1042_v1  ;;  %v1043_v19 = vld [vmem:[%s979_s28 + $0x8] sm:$0xf]  ;;  %s1041_s29 = sshll.u32 %s1395_s12, 2 }
  0x12   : > { %1073 = vmatpush3.bf16.xpose.msra.mxu0 %v310_v3  ;;  %v390_v20 = vsel %vm388_vm4, %v1043_v19, 0  ;;  %v1048_v58 = vcombine.low %v1043_v19, %v1043_v19  ;;  %s283_s5 = scalar_lea.vmem %s1389_s3, %s1041_s29 }
  0x13   : > { %v303_v5 = vmul.f32 0.17677669, %v302_v4  ;;  %1090 = vmatprep.subr.bf16.mxu0 %v1204_v0  ;;  %441 = vrot.lane.b32.xlu1 %v1046_v14, %s1208_s23 }
  0x14   : > { %1079 = vmatpush3.bf16.msra.mxu1 %v390_v20 }
  0x15   : > { %v304_v6 = vpack.c.bf16 %v303_v5, %v303_v5  ;;  %v352_v15 = vld [vmem:[#allocation2] sm:$0xff]  ;;  %1084 = vmatprep.subr.bf16.mxu1 %v1204_v0  ;;  %v490_v55 = vld [vmem:[#allocation2 + $0x8] sm:$0xff] }
  0x16   : > { %v632_v59 = vld [vmem:[#allocation2 + $0x10] sm:$0xff]  ;;  %v1329_v63 = vld [vmem:[#allocation2 + $0x18] sm:$0xff] }
  0x17   : > { %436 = vrot.lane.b32.xlu1 %v304_v6, %s1208_s23 }
  0x19   : > { %1075 = vmatmul.mubr.msk.bf16.vlgmr.msra.gmra.mxu0 %vm305_vm1, %v304_v6 }
  0x1a   : > { %1092 = vmatprep.mubr.msk.bf16.mxu0 %vm1205_vm0, %v1204_v0 }
  0x1b   : > { %583 = vrot.lane.b32.xlu1 %v1046_v14, %s1209_s24 }
  0x1f   : > { %581 = vrot.lane.b32.xlu1 %v304_v6, %s1209_s24 }
  0x23   : > { %722 = vrot.lane.b32.xlu1 %v1046_v14, %s1210_s25 }
  0x27   : > { %720 = vrot.lane.b32.xlu1 %v304_v6, %s1210_s25 }
  0x85   : > { %v442_v24 = vpop.permute.xlu1 %441 }
  0x86   : > { %v447_v27 = vsel %vm305_vm1, %v442_v24, 0 }
  0x89   : > { %v437_v25 = vpop.permute.xlu1 %436 }
  0x8d   : > { %v584_v29 = vpop.permute.xlu1 %583 }
  0x8e   : > { %v589_v31 = vsel %vm305_vm1, %v584_v29, 0 }
  0x91   : > { %v582_v30 = vpop.permute.xlu1 %581 }
  0x95   : > { %v723_v32 = vpop.permute.xlu1 %722 }
  0x96   : > { %v728_v33 = vsel %vm305_vm1, %v723_v32, 0 }
  0x99   : > { %v721_v34 = vpop.permute.xlu1 %720 }
  0xd9   : > { %v346_v8 = vpop.f32.mrf.mxu0 }
  0xda   : > { %v354_v9 = vsel %vm353_vm3, %v346_v8, -inf }
  0xdb   : > { %355 = vmax.xlane.f32.xlu0 %v354_v9  ;;  %v1076_v10 = vpop.f32.mrf.mxu0 }
  0xdd   : > { %v349_v11 = vpop.f32.mrf.mxu0 }
  0xdf   : > { %v1077_v12 = vpop.f32.mrf.mxu0 }
 0x164   : > { %v356_v16 = vpop.xlane.xlu0 %355 }
 0x165   : > { %v357_v17 = vmax.f32 %v352_v15, %v356_v16 }
 0x167   : > { %v358_v18 = vsub.f32 %v352_v15, %v357_v17  ;;  %434 = vst.msk [vmem:[#allocation2] sm:$0xff] %vm289_vm2, %v357_v17  ;;  %363 = vperm.xlu0 %1152, %v357_v17  }
 0x169   : > { %v359_v54 = vmul.f32 1.442695, %v358_v18 }
 0x1e2   : > { %v364_v21 = vpop.permute.xlu0 %363 }
 0x1e3   : > { %v366_v22 = vsub.f32 %v346_v8, %v364_v21 }
 0x1e5   : > { %v367_v23 = vmul.f32 1.442695, %v366_v22 }
 0x1e7   : > { %1156 = vpow2.f32 %v367_v23 }
 0x1e8   : > { %1158 = vpow2.f32 %v359_v54 }
 0x1f4   : > { %v1300_v26 = vpop.eup %1156 }
 0x1f5   : > { %v384_v28 = vpack.c.bf16 %v1300_v26, %v1300_v26  ;;  %v1327_v62 = vpop.eup %1158  ;;  %v371_v7 = vsel %vm353_vm3, %v1300_v26, 0.0 }
 0x1f7   : > { %1081 = vmatmul.mubr.msk.bf16.vlgmr.msra.gmra.mxu1 %vm353_vm3, %v384_v28 }
 0x1f8   : > { %1085 = vmatpush3.bf16.xpose.msra.mxu1 %v447_v27  ;;  %1086 = vmatprep.mubr.msk.bf16.mxu1 %vm1205_vm0, %v1204_v0 }
 0x1f9   : > { %1096 = vmatprep.subr.bf16.mxu1 %v1204_v0 }
 0x1ff   : > { %1087 = vmatmul.mubr.msk.bf16.vlgmr.msra.gmra.mxu1 %vm305_vm1, %v437_v25 }
 0x200   : > { %1097 = vmatpush3.bf16.xpose.msra.mxu1 %v589_v31  ;;  %1098 = vmatprep.mubr.msk.bf16.mxu1 %vm1205_vm0, %v1204_v0 }
 0x201   : > { %1108 = vmatprep.subr.bf16.mxu1 %v1204_v0 }
 0x207   : > { %1099 = vmatmul.mubr.msk.bf16.vlgmr.msra.gmra.mxu1 %vm305_vm1, %v582_v30 }
 0x208   : > { %1109 = vmatpush3.bf16.xpose.msra.mxu1 %v728_v33  ;;  %1110 = vmatprep.mubr.msk.bf16.mxu1 %vm1205_vm0, %v1204_v0 }
 0x20f   : > { %1111 = vmatmul.mubr.msk.bf16.vlgmr.msra.gmra.mxu1 %vm305_vm1, %v721_v34 }
 0x2b7   : > { %v1319_v35 = vpop.f32.mrf.mxu1 }
 0x2b9   : > { %v1082_v36 = vpop.f32.mrf.mxu1 }
 0x2bb   : > { %v429_v37 = vpop.f32.mrf.mxu1 }
 0x2bd   : > { %v1083_v38 = vpop.f32.mrf.mxu1 }
 0x2be   : > { %v369_v38 = vld [vmem:[#allocation3] sm:$0xff] }
 0x2bf   : > { %v483_v39 = vpop.f32.mrf.mxu1 }
 0x2c0   : > { %v491_v40 = vsel %vm353_vm3, %v483_v39, -inf }
 0x2c1   : > { %492 = vmax.xlane.f32.xlu1 %v491_v40  ;;  %v1088_v41 = vpop.f32.mrf.mxu1 }
 0x2c3   : > { %v486_v42 = vpop.f32.mrf.mxu1 }
 0x2c5   : > { %v1089_v43 = vpop.f32.mrf.mxu1 }
 0x2c6   : > { %v507_v43 = vld [vmem:[#allocation3 + $0x8] sm:$0xff] }
 0x2c7   : > { %v625_v44 = vpop.f32.mrf.mxu1 }
 0x2c8   : > { %v633_v45 = vsel %vm353_vm3, %v625_v44, -inf }
 0x2c9   : > { %634 = vmax.xlane.f32.xlu0 %v633_v45  ;;  %v1100_v46 = vpop.f32.mrf.mxu1 }
 0x2ca   : > { %v649_v46 = vld [vmem:[#allocation3 + $0x10] sm:$0xff] }
 0x2cb   : > { %v628_v47 = vpop.f32.mrf.mxu1 }
 0x2cd   : > { %v1101_v48 = vpop.f32.mrf.mxu1 }
 0x2cf   : > { %v764_v49 = vpop.f32.mrf.mxu1 }
 0x2d0   : > { %v772_v50 = vsel %vm353_vm3, %v764_v49, -inf }
 0x2d1   : > { %773 = vmax.xlane.f32.xlu1 %v772_v50  ;;  %v1112_v51 = vpop.f32.mrf.mxu1 }
 0x2d2   : > { %v788_v51 = vld [vmem:[#allocation3 + $0x18] sm:$0xff] }
 0x2d3   : > { %v767_v52 = vpop.f32.mrf.mxu1 }
 0x2d5   : > { %v1113_v53 = vpop.f32.mrf.mxu1 }
 0x34a   : > { %v493_v56 = vpop.xlane.xlu1 %492 }
 0x34b   : > { %v494_v57 = vmax.f32 %v490_v55, %v493_v56 }
 0x34d   : > { %580 = vst.msk [vmem:[#allocation2 + $0x8] sm:$0xff] %vm289_vm2, %v494_v57  ;;  %500 = vperm.xlu1 %1153, %v494_v57   ;;  %v495_v4 = vsub.f32 %v490_v55, %v494_v57 }
 0x34f   : > { %v496_v5 = vmul.f32 1.442695, %v495_v4 }
 0x351   : > { %525 = vrot.lane.b32.xlu1 %v1048_v58, %s1208_s23  ;;  %1160 = vpow2.f32 %v496_v5 }
 0x352   : > { %v635_v60 = vpop.xlane.xlu0 %634 }
 0x353   : > { %v636_v61 = vmax.f32 %v632_v59, %v635_v60 }
 0x355   : > { %719 = vst.msk [vmem:[#allocation2 + $0x10] sm:$0xff] %vm289_vm2, %v636_v61  ;;  %642 = vperm.xlu0 %1152, %v636_v61   ;;  %v637_v6 = vsub.f32 %v632_v59, %v636_v61 }
 0x357   : > { %v638_v8 = vmul.f32 1.442695, %v637_v6 }
 0x359   : > { %380 = vperm.xlu0 %1152, %v1327_v62   ;;  %1162 = vpow2.f32 %v638_v8 }
 0x35a   : > { %v774_v1 = vpop.xlane.xlu1 %773 }
 0x35b   : > { %v1333_v2 = vmax.f32 %v1329_v63, %v774_v1 }
 0x35d   : > { %v776_v3 = vsub.f32 %v1329_v63, %v1333_v2  ;;  %858 = vst.msk [vmem:[#allocation2 + $0x18] sm:$0xff] %vm289_vm2, %v1333_v2  ;;  %781 = vperm.xlu1 %1153, %v1333_v2  }
 0x35e   : > { %v1161_v9 = vpop.eup %1160 }
 0x35f   : > { %v777_v42 = vmul.f32 1.442695, %v776_v3 }
 0x361   : > { %664 = vrot.lane.b32.xlu1 %v1048_v58, %s1209_s24 }
 0x365   : > { %803 = vrot.lane.b32.xlu1 %v1048_v58, %s1210_s25 }
 0x366   : > { %v1163_v10 = vpop.eup %1162 }
 0x367   : > { %v650_v47 = vmul.f32 %v1163_v10, %v649_v46 }
 0x389   : > { %372 = vadd.xlane.f32.xlu1 %v371_v7 }
 0x39a   : > { %517 = vperm.xlu1 %1153, %v1161_v9  }
 0x39e   : > { %659 = vperm.xlu1 %1153, %v1163_v10  }
 0x3c8   : > { %v501_v11 = vpop.permute.xlu1 %500 }
 0x3c9   : > { %v503_v12 = vsub.f32 %v483_v39, %v501_v11  ;;  %v370_v39 = vmul.f32 %v1327_v62, %v369_v38 }
 0x3cb   : > { %v504_v13 = vmul.f32 1.442695, %v503_v12 }
 0x3cc   : > { %v526_v14 = vpop.permute.xlu1 %525 }
 0x3cd   : > { %1164 = vpow2.f32 %v504_v13  ;;  %v531_v15 = vsel %vm388_vm4, %v526_v14, 0 }
 0x3ce   : > { %1091 = vmatpush3.bf16.msra.mxu0 %v531_v15 }
 0x3cf   : > { %1102 = vmatprep.subr.bf16.mxu0 %v1204_v0 }
 0x3d0   : > { %v643_v16 = vpop.permute.xlu0 %642 }
 0x3d1   : > { %v645_v17 = vsub.f32 %v625_v44, %v643_v16 }
 0x3d3   : > { %v646_v18 = vmul.f32 1.442695, %v645_v17 }
 0x3d4   : > { %v381_v19 = vpop.permute.xlu0 %380 }
 0x3d5   : > { %1166 = vpow2.f32 %v646_v18  ;;  %v383_v20 = vmul.f32 0.0, %v381_v19 }
 0x3d7   : > { %v432_v21 = vadd.f32 %v1319_v35, %v383_v20 }
 0x3d8   : > { %v782_v22 = vpop.permute.xlu1 %781 }
 0x3d9   : > { %433 = vst.msk [vmem:[#allocation4] sm:$0xff] %vm305_vm1, %v432_v21  ;;  %v784_v23 = vsub.f32 %v764_v49, %v782_v22 }
 0x3da   : > { %v1165_v24 = vpop.eup %1164 }
 0x3db   : > { %v785_v25 = vmul.f32 1.442695, %v784_v23  ;;  %v509_v26 = vsel %vm353_vm3, %v1165_v24, 0.0  ;;  %v521_v27 = vpack.c.bf16 %v1165_v24, %v1165_v24 }
 0x3dc   : > { %v665_v28 = vpop.permute.xlu1 %664  ;;  %510 = vadd.xlane.f32.xlu0 %v509_v26 }
 0x3dd   : > { %1168 = vpow2.f32 %v785_v25  ;;  %v670_v29 = vsel %vm388_vm4, %v665_v28, 0  ;;  %1093 = vmatmul.mubr.msk.bf16.vlgmr.msra.gmra.mxu0 %vm353_vm3, %v521_v27 }
 0x3de   : > { %1103 = vmatpush3.bf16.msra.mxu0 %v670_v29  ;;  %1104 = vmatprep.mubr.msk.bf16.mxu0 %vm1205_vm0, %v1204_v0  ;;  %1170 = vpow2.f32 %v777_v42 }
 0x3df   : > { %1114 = vmatprep.subr.bf16.mxu0 %v1204_v0 }
 0x3e0   : > { %v804_v30 = vpop.permute.xlu1 %803  ;;  %v514_v13 = vld [vmem:[#allocation4] sm:$0xff] }
 0x3e1   : > { %v809_v34 = vsel %vm388_vm4, %v804_v30, 0 }
 0x3e2   : > { %v1167_v31 = vpop.eup %1166 }
 0x3e3   : > { %v651_v32 = vsel %vm353_vm3, %v1167_v31, 0.0  ;;  %v663_v33 = vpack.c.bf16 %v1167_v31, %v1167_v31 }
 0x3e4   : > { %652 = vadd.xlane.f32.xlu0 %v651_v32 }
 0x3e5   : > { %1105 = vmatmul.mubr.msk.bf16.vlgmr.msra.gmra.mxu0 %vm353_vm3, %v663_v33 }
 0x3e6   : > { %1115 = vmatpush3.bf16.msra.mxu0 %v809_v34  ;;  %1116 = vmatprep.mubr.msk.bf16.mxu0 %vm1205_vm0, %v1204_v0  ;;  %v508_v0 = vmul.f32 %v1161_v9, %v507_v43 }
 0x3ea   : > { %v1169_v35 = vpop.eup %1168 }
 0x3eb   : > { %v790_v36 = vsel %vm353_vm3, %v1169_v35, 0.0  ;;  %v802_v37 = vpack.c.bf16 %v1169_v35, %v1169_v35  ;;  %v1171_v50 = vpop.eup %1170 }
 0x3ec   : > { %791 = vadd.xlane.f32.xlu0 %v790_v36  ;;  %v789_v52 = vmul.f32 %v1171_v50, %v788_v51 }
 0x3ed   : > { %1117 = vmatmul.mubr.msk.bf16.vlgmr.msra.gmra.mxu0 %vm353_vm3, %v802_v37 }
 0x412   : > { %v373_v40 = vpop.xlane.xlu1 %372 }
 0x413   : > { %v374_v41 = vadd.f32 %v373_v40, %v370_v39 }
 0x415   : > { %376 = vst.msk [vmem:[#allocation3] sm:$0xff] %vm289_vm2, %v374_v41 }
 0x416   : > { %v518_v12 = vpop.permute.xlu1 %517 }
 0x417   : > { %v520_v14 = vmul.f32 %v518_v12, %v514_v13 }
 0x41a   : > { %v660_v17 = vpop.permute.xlu1 %659 }
 0x41c   : > { %v862_v55 = vld [vmem:[#allocation3] sm:$0xff] }
 0x41d   : > { %1172 = vrcp.f32 %v862_v55 }
 0x42a   : > { %v1173_v59 = vpop.eup %1172 }
 0x465   : > { %v511_v44 = vpop.xlane.xlu0 %510 }
 0x466   : > { %v512_v45 = vadd.f32 %v511_v44, %v508_v0 }
 0x468   : > { %513 = vst.msk [vmem:[#allocation3 + $0x8] sm:$0xff] %vm289_vm2, %v512_v45 }
 0x46d   : > { %v653_v48 = vpop.xlane.xlu0 %652 }
 0x46e   : > { %v654_v49 = vadd.f32 %v653_v48, %v650_v47 }
 0x46f   : > { %v871_v61 = vld [vmem:[#allocation3 + $0x8] sm:$0xff] }
 0x470   : > { %655 = vst.msk [vmem:[#allocation3 + $0x10] sm:$0xff] %vm289_vm2, %v654_v49 }
 0x475   : > { %v792_v53 = vpop.xlane.xlu0 %791 }
 0x476   : > { %v793_v54 = vadd.f32 %v792_v53, %v789_v52 }
 0x477   : > { %v879_v56 = vld [vmem:[#allocation3 + $0x10] sm:$0xff] }
 0x478   : > { %794 = vst.msk [vmem:[#allocation3 + $0x18] sm:$0xff] %vm289_vm2, %v793_v54  ;;  %1174 = vrcp.f32 %v879_v56 }
 0x479   : > { %1176 = vrcp.f32 %v871_v61 }
 0x47f   : > { %v887_v2 = vld [vmem:[#allocation3 + $0x18] sm:$0xff] }
 0x480   : > { %1178 = vrcp.f32 %v887_v2 }
 0x485   : > { %v1175_v63 = vpop.eup %1174 }
 0x486   : > { %v1177_v8 = vpop.eup %1176 }
 0x48d   : > { %v1179_v11 = vpop.eup %1178 }
 0x49d   : > { %v567_v57 = vpop.f32.mrf.mxu0 }
 0x49e   : > { %574 = vrot.lane.b32.xlu0 %v567_v57, %s1210_s25 }
 0x49f   : > { %v1094_v58 = vpop.f32.mrf.mxu0 }
 0x4a1   : > { %v570_v60 = vpop.f32.mrf.mxu0 }
 0x4a2   : > { %867 = vperm.xlu0 %1152, %v1173_v59  }
 0x4a3   : > { %v1095_v62 = vpop.f32.mrf.mxu0 }
 0x4a5   : > { %v706_v1 = vpop.f32.mrf.mxu0 }
 0x4a6   : > { %883 = vperm.xlu0 %1152, %v1175_v63   ;;  %713 = vrot.lane.b32.xlu1 %v706_v1, %s1209_s24 }
 0x4a7   : > { %v1106_v3 = vpop.f32.mrf.mxu0 }
 0x4a9   : > { %v709_v4 = vpop.f32.mrf.mxu0 }
 0x4aa   : > { %798 = vperm.xlu1 %1153, %v1171_v50  }
 0x4ab   : > { %v1107_v5 = vpop.f32.mrf.mxu0 }
 0x4ad   : > { %v845_v6 = vpop.f32.mrf.mxu0 }
 0x4ae   : > { %852 = vrot.lane.b32.xlu1 %v845_v6, %s1208_s23 }
 0x4af   : > { %v1118_v7 = vpop.f32.mrf.mxu0 }
 0x4b1   : > { %v848_v9 = vpop.f32.mrf.mxu0 }
 0x4b2   : > { %875 = vperm.xlu1 %1153, %v1177_v8  }
 0x4b3   : > { %v1119_v10 = vpop.f32.mrf.mxu0 }
 0x4b6   : > { %891 = vperm.xlu1 %1153, %v1179_v11  }
 0x510   : > { %v575_v15 = vpop.permute.xlu0 %574 }
 0x511   : > { %v577_v16 = vadd.f32 %v575_v15, %v520_v14 }
 0x513   : > { %579 = vst.msk [vmem:[#allocation4] sm:$0xff] %vm578_vm5, %v577_v16 }
 0x518   : > { %v714_v20 = vpop.permute.xlu1 %713 }
 0x51a   : > { %v656_v18 = vld [vmem:[#allocation4] sm:$0xff] }
 0x51b   : > { %v662_v19 = vmul.f32 %v660_v17, %v656_v18 }
 0x51d   : > { %v716_v21 = vadd.f32 %v714_v20, %v662_v19  ;;  %v868_v27 = vpop.permute.xlu0 %867 }
 0x51f   : > { %718 = vst.msk [vmem:[#allocation4] sm:$0xff] %vm717_vm6, %v716_v21 }
 0x521   : > { %v884_v29 = vpop.permute.xlu0 %883 }
 0x525   : > { %v799_v22 = vpop.permute.xlu1 %798 }
 0x526   : > { %v795_v23 = vld [vmem:[#allocation4] sm:$0xff] }
 0x527   : > { %v801_v24 = vmul.f32 %v799_v22, %v795_v23 }
 0x529   : > { %v853_v25 = vpop.permute.xlu1 %852 }
 0x52a   : > { %v855_v26 = vadd.f32 %v853_v25, %v801_v24 }
 0x52c   : > { %857 = vst.msk [vmem:[#allocation4] sm:$0xff] %vm856_vm7, %v855_v26 }
 0x52d   : > { %v876_v28 = vpop.permute.xlu1 %875 }
 0x531   : > { %v892_v34 = vpop.permute.xlu1 %891 }
 0x533   : > { %v864_v30 = vld [vmem:[#allocation4] sm:$0xff] }
 0x534   : > { %v870_v31 = vmul.f32 %v868_v27, %v864_v30  ;;  %v886_v32 = vmul.f32 %v884_v29, %v864_v30  ;;  %v878_v33 = vmul.f32 %v876_v28, %v864_v30  ;;  %v894_v36 = vmul.f32 %v892_v34, %v864_v30 }
 0x536   : > { %v895_v35 = vsel %vm305_vm1, %v870_v31, %v878_v33 }
 0x537   : > { %v897_v37 = vsel %vm896_vm8, %v895_v35, %v886_v32 }
 0x538   : > { %v899_v38 = vsel %vm898_vm9, %v897_v37, %v894_v36 }
 0x539   : > { %v900_v39 = vpack.c.bf16 %v899_v38, %v899_v38 }
 0x53b   : > { %901 = vst [vmem:[%s283_s5] sm:$0xf] %v900_v39 }
 0x53c PF: > { %s13_s14 = sadd.s32 1, %s1202_s14   ;;  %s1390_s12 = smov %s1198_s13 }
 0x53d   : > { %p10_p5 = scmp.ge.s32.totalorder %s13_s14, 4   ;;  %s1391_s13 = smov %s1393_s15 }
 0x53f   :  { %12 = sbr.rel (!%p10_p5) target bundleno = 2 (0x2), region = 82 }

// kernel: transformer_forward.19
= control target key start
LH: loop header
LB: loop body
LE: loop exit
PB: predicated region body
PF: predicated region fallthrough
CT: control target
= control target key end

     0   :  { %v586_v0 = vmov 0.0   ;;  %vm587_vm0 = vmmov 0   ;;  %v588_v3 = vmov 0   ;;  %v358_v31 = vlaneseq  ;;  %s722_s1 = inlined_call_operand.vmem [shape: bf16[384,128], index: 1, kind: input, shape index: {}]   ;;  %s723_s0 = inlined_call_operand.vmem [shape: f32[16,128], index: 0, kind: input, shape index: {}]   ;;  %s724_s2 = inlined_call_operand.vmem [shape: f32[16,1], index: 2, kind: input, shape index: {}]   ;;  %s725_s3 = inlined_call_operand.vmem [shape: f32[1,384], index: 3, kind: input, shape index: {}]   ;;  %s726_s4 = inlined_call_operand.vmem [shape: bf16[16,384], index: 4, kind: output, shape index: {}]  }
   0x1   :  { %514 = vmatprep.subr.bf16.mxu1 %v586_v0  ;;  %v538_v1 = vld [vmem:[%s722_s1 + $0x78] sm:$0xff]   ;;  %530 = vmatprep.mubr.msk.bf16.mxu1 %vm587_vm0, %v586_v0  ;;  %v541_v5 = vld [vmem:[%s722_s1 + $0x70] sm:$0xff]   ;;  %v544_v8 = vld [vmem:[%s722_s1 + $0x68] sm:$0xff]  }
   0x2   :  { %v539_v2 = vld [vmem:[%s722_s1 + $0xb8] sm:$0xff]   ;;  %537 = vset.pattern.permute.xlu0 %v588_v3  ;;  %487 = vmatprep.subr.bf16.mxu0 %v538_v1  ;;  %v542_v6 = vld [vmem:[%s722_s1 + $0xb0] sm:$0xff]   ;;  %v545_v9 = vld [vmem:[%s722_s1 + $0xa8] sm:$0xff]   ;;  %v359_v32 = vshrl.u32 %v358_v31, 7 }
   0x3   :  { %v540_v4 = vld [vmem:[%s722_s1 + $0x38] sm:$0xff]   ;;  %515 = vmatpush3.bf16.xpose.msra.mxu1 %v539_v2  ;;  %v543_v7 = vld [vmem:[%s722_s1 + $0x30] sm:$0xff]   ;;  %v546_v10 = vld [vmem:[%s722_s1 + $0x28] sm:$0xff]  }
   0x4   :  { %488 = vmatpush3.bf16.xpose.msra.mxu0 %v540_v4  ;;  %516 = vmatprep.subr.bf16.mxu1 %v586_v0  ;;  %v547_v11 = vld [vmem:[%s722_s1 + $0x60] sm:$0xff]   ;;  %v19_v15 = vld [vmem:[%s723_s0 + $0x8] sm:$0xff]  ;;  %v550_v17 = vld [vmem:[%s722_s1 + $0x58] sm:$0xff]   ;;  %v368_v33 = vsub.s32 2, %v359_v32  ;;  %v360_v36 = vsub.s32 0, %v359_v32  ;;  %v364_v37 = vsub.s32 1, %v359_v32 }
   0x5   :  { %489 = vmatprep.subr.bf16.mxu0 %v541_v5  ;;  %v548_v12 = vld [vmem:[%s722_s1 + $0xa0] sm:$0xff]   ;;  %v339_v19 = vld [vmem:[%s724_s2 + $0x8] sm:$0xff]  ;;  %v551_v20 = vld [vmem:[%s722_s1 + $0x98] sm:$0xff]  }
   0x6   :  { %v549_v13 = vld [vmem:[%s722_s1 + $0x20] sm:$0xff]   ;;  %v552_v21 = vld [vmem:[%s722_s1 + $0x18] sm:$0xff]   ;;  %v553_v22 = vld [vmem:[%s722_s1 + $0x50] sm:$0xff]  }
   0x7   :  { %v18_v14 = vld [vmem:[%s723_s0] sm:$0xff]  ;;  %v554_v23 = vld [vmem:[%s722_s1 + $0x90] sm:$0xff]   ;;  %v556_v25 = vld [vmem:[%s722_s1 + $0x48] sm:$0xff]  }
   0x8   :  { %v338_v16 = vld [vmem:[%s724_s2] sm:$0xff]  ;;  %v20_v18 = vpack.c.bf16 %v19_v15, %v18_v14  ;;  %v555_v24 = vld [vmem:[%s722_s1 + $0x10] sm:$0xff]   ;;  %v557_v26 = vld [vmem:[%s722_s1 + $0x88] sm:$0xff]  }
   0x9   :  { %342 = vperm.xlu0 %537, %v338_v16   ;;  %v558_v27 = vld [vmem:[%s722_s1 + $0x8] sm:$0xff]   ;;  %v559_v28 = vld [vmem:[%s722_s1 + $0x40] sm:$0xff]  }
   0xa   :  { %503 = vmatprep.mubr.bf16.mxu0 %v20_v18  ;;  %v560_v29 = vld [vmem:[%s722_s1 + $0x80] sm:$0xff]  }
   0xb   :  { %517 = vmatpush3.bf16.xpose.msra.mxu1 %v542_v6  ;;  %v561_v30 = vld [vmem:[%s722_s1] sm:$0xff]  }
   0xc   :  { %490 = vmatpush3.bf16.xpose.msra.mxu0 %v543_v7  ;;  %518 = vmatprep.subr.bf16.mxu1 %v586_v0  ;;  %v356_v35 = vld [vmem:[%s725_s3] sm:$0x7] }
   0xd   :  { %491 = vmatprep.subr.bf16.mxu0 %v544_v8  ;;  %347 = vperm.xlu0 %537, %v339_v19   ;;  %v369_v38 = vrot.slane %v356_v35, %v368_v33  ;;  %v361_v40 = vrot.slane %v356_v35, %v360_v36  ;;  %v365_v46 = vrot.slane %v356_v35, %v364_v37 }
  0x13   :  { %519 = vmatpush3.bf16.xpose.msra.mxu1 %v545_v9 }
  0x14   :  { %492 = vmatpush3.bf16.xpose.msra.mxu0 %v546_v10  ;;  %520 = vmatprep.subr.bf16.mxu1 %v586_v0 }
  0x15   :  { %493 = vmatprep.subr.bf16.mxu0 %v547_v11 }
  0x1b   :  { %521 = vmatpush3.bf16.xpose.msra.mxu1 %v548_v12 }
  0x1c   :  { %494 = vmatpush3.bf16.xpose.msra.mxu0 %v549_v13  ;;  %522 = vmatprep.subr.bf16.mxu1 %v586_v0 }
  0x1d   :  { %495 = vmatprep.subr.bf16.mxu0 %v550_v17 }
  0x23   :  { %523 = vmatpush3.bf16.xpose.msra.mxu1 %v551_v20 }
  0x24   :  { %496 = vmatpush3.bf16.xpose.msra.mxu0 %v552_v21  ;;  %524 = vmatprep.subr.bf16.mxu1 %v586_v0 }
  0x25   :  { %497 = vmatprep.subr.bf16.mxu0 %v553_v22 }
  0x2b   :  { %525 = vmatpush3.bf16.xpose.msra.mxu1 %v554_v23 }
  0x2c   :  { %498 = vmatpush3.bf16.xpose.msra.mxu0 %v555_v24  ;;  %526 = vmatprep.subr.bf16.mxu1 %v586_v0 }
  0x2d   :  { %499 = vmatprep.subr.bf16.mxu0 %v556_v25 }
  0x33   :  { %527 = vmatpush3.bf16.xpose.msra.mxu1 %v557_v26 }
  0x34   :  { %500 = vmatpush3.bf16.xpose.msra.mxu0 %v558_v27  ;;  %528 = vmatprep.subr.bf16.mxu1 %v586_v0 }
  0x35   :  { %501 = vmatprep.subr.bf16.mxu0 %v559_v28 }
  0x3b   :  { %529 = vmatpush3.bf16.xpose.msra.mxu1 %v560_v29 }
  0x3c   :  { %502 = vmatpush3.bf16.xpose.msra.mxu0 %v561_v30 }
  0x42   :  { %531 = vmatmul.mubr.bf16.vlgmr.msra.gmra.mxu1 %v20_v18 }
  0x43   :  { %504 = vmatmul.mubr.bf16.vlgmr.msra.gmra.mxu0 %v20_v18 }
  0x84   :  { %v343_v34 = vpop.permute.xlu0 %342 }
  0x88   :  { %v348_v45 = vpop.permute.xlu0 %347 }
 0x102   :  { %v290_v39 = vpop.f32.mrf.mxu1 }
 0x103   :  { %v352_v41 = vmul.f32 %v343_v34, %v290_v39  ;;  %v247_v42 = vpop.f32.mrf.mxu0 }
 0x104   :  { %v350_v43 = vmul.f32 %v343_v34, %v247_v42  ;;  %v532_v44 = vpop.f32.mrf.mxu1 }
 0x105   :  { %v375_v47 = vadd.f32 %v369_v38, %v352_v41  ;;  %v249_v48 = vpop.f32.mrf.mxu0 }
 0x106   :  { %v373_v49 = vadd.f32 %v361_v40, %v350_v43  ;;  %v351_v50 = vmul.f32 %v343_v34, %v249_v48  ;;  %v293_v51 = vpop.f32.mrf.mxu1 }
 0x107   :  { %v475_v52 = vmul.f32 -1.442695, %v375_v47  ;;  %v355_v53 = vmul.f32 %v348_v45, %v293_v51  ;;  %v251_v54 = vpop.f32.mrf.mxu0 }
 0x108   :  { %v473_v55 = vmul.f32 -1.442695, %v373_v49  ;;  %v374_v56 = vadd.f32 %v365_v46, %v351_v50  ;;  %v353_v57 = vmul.f32 %v348_v45, %v251_v54  ;;  %v533_v58 = vpop.f32.mrf.mxu1 }
 0x109   :  { %562 = vpow2.f32 %v475_v52  ;;  %v378_v59 = vadd.f32 %v369_v38, %v355_v53  ;;  %v253_v60 = vpop.f32.mrf.mxu0 }
 0x10a   :  { %564 = vpow2.f32 %v473_v55  ;;  %v474_v61 = vmul.f32 -1.442695, %v374_v56  ;;  %v376_v62 = vadd.f32 %v361_v40, %v353_v57  ;;  %v354_v63 = vmul.f32 %v348_v45, %v253_v60 }
 0x10b   :  { %v478_v0 = vmul.f32 -1.442695, %v378_v59 }
 0x10c   :  { %566 = vpow2.f32 %v474_v61  ;;  %v476_v1 = vmul.f32 -1.442695, %v376_v62  ;;  %v377_v2 = vadd.f32 %v365_v46, %v354_v63 }
 0x10d   :  { %568 = vpow2.f32 %v478_v0 }
 0x10e   :  { %570 = vpow2.f32 %v476_v1  ;;  %v477_v3 = vmul.f32 -1.442695, %v377_v2 }
 0x110   :  { %572 = vpow2.f32 %v477_v3 }
 0x116   :  { %v563_v4 = vpop.eup %562 }
 0x117   :  { %v565_v5 = vpop.eup %564  ;;  %v399_v6 = vadd.f32 1.0, %v563_v4 }
 0x118   :  { %v397_v7 = vadd.f32 1.0, %v565_v5 }
 0x119   :  { %v567_v8 = vpop.eup %566  ;;  %574 = vrcp.f32 %v399_v6 }
 0x11a   :  { %v569_v9 = vpop.eup %568  ;;  %576 = vrcp.f32 %v397_v7  ;;  %v398_v10 = vadd.f32 1.0, %v567_v8 }
 0x11b   :  { %v571_v11 = vpop.eup %570  ;;  %v402_v12 = vadd.f32 1.0, %v569_v9 }
 0x11c   :  { %578 = vrcp.f32 %v398_v10  ;;  %v400_v13 = vadd.f32 1.0, %v571_v11 }
 0x11d   :  { %v573_v14 = vpop.eup %572  ;;  %580 = vrcp.f32 %v402_v12 }
 0x11e   :  { %582 = vrcp.f32 %v400_v13  ;;  %v401_v15 = vadd.f32 1.0, %v573_v14 }
 0x120   :  { %584 = vrcp.f32 %v401_v15 }
 0x126   :  { %v575_v16 = vpop.eup %574 }
 0x127   :  { %v577_v17 = vpop.eup %576  ;;  %v417_v18 = vmul.f32 %v575_v16, %v375_v47 }
 0x128   :  { %v415_v22 = vmul.f32 %v577_v17, %v373_v49 }
 0x129   :  { %v579_v19 = vpop.eup %578  ;;  %v484_v20 = vpack.c.bf16 %v417_v18, %v417_v18 }
 0x12a   :  { %v581_v21 = vpop.eup %580  ;;  %v416_v23 = vmul.f32 %v579_v19, %v374_v56 }
 0x12b   :  { %v583_v24 = vpop.eup %582  ;;  %442 = vst [vmem:[%s726_s4 + $0x8] sm:$0xf] %v484_v20  ;;  %v420_v25 = vmul.f32 %v581_v21, %v378_v59 }
 0x12c   :  { %v483_v26 = vpack.c.bf16 %v416_v23, %v415_v22  ;;  %v418_v29 = vmul.f32 %v583_v24, %v376_v62 }
 0x12d   :  { %v585_v27 = vpop.eup %584  ;;  %v486_v28 = vpack.c.bf16 %v420_v25, %v420_v25 }
 0x12e   :  { %441 = vst [vmem:[%s726_s4] sm:$0xff] %v483_v26  ;;  %v419_v30 = vmul.f32 %v585_v27, %v377_v2 }
 0x12f   :  { %444 = vst [vmem:[%s726_s4 + $0x14] sm:$0xf] %v486_v28 }
 0x130   :  { %v485_v31 = vpack.c.bf16 %v419_v30, %v418_v29 }
 0x132   :  { %443 = vst [vmem:[%s726_s4 + $0xc] sm:$0xff] %v485_v31 }

// kernel: transformer_forward.20
= control target key start
LH: loop header
LB: loop body
LE: loop exit
PB: predicated region body
PF: predicated region fallthrough
CT: control target
= control target key end

     0   :  { %v439_v0 = vmov 0.0   ;;  %vm440_vm0 = vmmov 0   ;;  %s562_s1 = inlined_call_operand.vmem [shape: bf16[128,384], index: 1, kind: input, shape index: {}]   ;;  %s563_s0 = inlined_call_operand.vmem [shape: bf16[16,384], index: 0, kind: input, shape index: {}]   ;;  %s564_s2 = inlined_call_operand.vmem [shape: f32[1,128], index: 2, kind: input, shape index: {}]   ;;  %s565_s3 = inlined_call_operand.vmem [shape: f32[16,128], index: 3, kind: input, shape index: {}, may-alias: {3,4}]   ;;  %s566_s4 = inlined_call_operand.vmem [shape: f32[16,128], index: 4, kind: output, shape index: {}, may-alias: {3,4}]  }
   0x1   :  { %373 = vmatprep.subr.bf16.mxu1 %v439_v0  ;;  %v395_v1 = vld [vmem:[%s562_s1 + $0xac] ss:$12 sps:$4 sm:$0xff]   ;;  %389 = vmatprep.mubr.msk.bf16.mxu1 %vm440_vm0, %v439_v0  ;;  %v397_v2 = vld [vmem:[%s562_s1 + $0xb0] ss:$12 sps:$4 sm:$0xff]   ;;  %v398_v3 = vld [vmem:[%s562_s1 + $0xa8] ss:$12 sps:$4 sm:$0xff]  }
   0x2   :  { %198 = vmatprep.subr.bf16.mxu0 %v395_v1  ;;  %374 = vmatpush3.bf16.xpose.msra.mxu1 %v397_v2  ;;  %v399_v4 = vld [vmem:[%s562_s1 + $0x94] ss:$12 sps:$4 sm:$0xff]   ;;  %v401_v5 = vld [vmem:[%s562_s1 + $0x98] ss:$12 sps:$4 sm:$0xff]   ;;  %v402_v6 = vld [vmem:[%s562_s1 + $0x90] ss:$12 sps:$4 sm:$0xff]  }
   0x3   :  { %199 = vmatpush1.bf16.xpose.msra.mxu0 %v398_v3  ;;  %375 = vmatprep.subr.bf16.mxu1 %v439_v0  ;;  %v403_v7 = vld [vmem:[%s562_s1 + $0x7c] ss:$12 sps:$4 sm:$0xff]   ;;  %v405_v8 = vld [vmem:[%s562_s1 + $0x80] ss:$12 sps:$4 sm:$0xff]   ;;  %v406_v9 = vld [vmem:[%s562_s1 + $0x78] ss:$12 sps:$4 sm:$0xff]  }
   0x4   :  { %200 = vmatprep.subr.bf16.mxu0 %v399_v4  ;;  %v407_v10 = vld [vmem:[%s562_s1 + $0x64] ss:$12 sps:$4 sm:$0xff]   ;;  %v409_v12 = vld [vmem:[%s562_s1 + $0x68] ss:$12 sps:$4 sm:$0xff]   ;;  %v410_v13 = vld [vmem:[%s562_s1 + $0x60] ss:$12 sps:$4 sm:$0xff]  }
   0x5   :  { %v429_v11 = vld [vmem:[%s563_s0 + $0x4] ss:$12 sps:$4 sm:$0xff]   ;;  %v411_v14 = vld [vmem:[%s562_s1 + $0x4c] ss:$12 sps:$4 sm:$0xff]   ;;  %v414_v16 = vld [vmem:[%s562_s1 + $0x48] ss:$12 sps:$4 sm:$0xff]  }
   0x6   :  { %230 = vmatprep.mubr.bf16.mxu0 %v429_v11  ;;  %v413_v15 = vld [vmem:[%s562_s1 + $0x50] ss:$12 sps:$4 sm:$0xff]   ;;  %v415_v17 = vld [vmem:[%s562_s1 + $0x34] ss:$12 sps:$4 sm:$0xff]   ;;  %v417_v18 = vld [vmem:[%s562_s1 + $0x38] ss:$12 sps:$4 sm:$0xff]  }
   0x7   :  { %v418_v19 = vld [vmem:[%s562_s1 + $0x30] ss:$12 sps:$4 sm:$0xff]   ;;  %v421_v21 = vld [vmem:[%s562_s1 + $0x20] ss:$12 sps:$4 sm:$0xff]   ;;  %v422_v22 = vld [vmem:[%s562_s1 + $0x18] ss:$12 sps:$4 sm:$0xff]  }
   0x8   :  { %v419_v20 = vld [vmem:[%s562_s1 + $0x1c] ss:$12 sps:$4 sm:$0xff]   ;;  %v423_v23 = vld [vmem:[%s562_s1 + $0x4] ss:$12 sps:$4 sm:$0xff]   ;;  %v426_v25 = vld [vmem:[%s562_s1] ss:$12 sps:$4 sm:$0xff]  }
   0x9   :  { %v425_v24 = vld [vmem:[%s562_s1 + $0x8] ss:$12 sps:$4 sm:$0xff]   ;;  %v427_v27 = vld [vmem:[%s563_s0] ss:$12 sps:$4 sm:$0xff]  }
   0xa   :  { %376 = vmatpush3.bf16.xpose.msra.mxu1 %v401_v5  ;;  %v430_v26 = vld [vmem:[%s563_s0 + $0x8] ss:$12 sps:$4 sm:$0xff]   ;;  %v361_v30 = vld [vmem:[%s564_s2] ss:$0 sm:$0xff] }
   0xb   :  { %201 = vmatpush1.bf16.xpose.msra.mxu0 %v402_v6  ;;  %377 = vmatprep.subr.bf16.mxu1 %v439_v0  ;;  %v324_v48 = vld [vmem:[%s565_s3] sm:$0xff]  ;;  %v325_v52 = vld [vmem:[%s565_s3 + $0x8] sm:$0xff] }
   0xc   :  { %202 = vmatprep.subr.bf16.mxu0 %v403_v7 }
  0x12   :  { %378 = vmatpush3.bf16.xpose.msra.mxu1 %v405_v8 }
  0x13   :  { %203 = vmatpush1.bf16.xpose.msra.mxu0 %v406_v9  ;;  %379 = vmatprep.subr.bf16.mxu1 %v439_v0 }
  0x14   :  { %204 = vmatprep.subr.bf16.mxu0 %v407_v10 }
  0x1a   :  { %380 = vmatpush3.bf16.xpose.msra.mxu1 %v409_v12 }
  0x1b   :  { %205 = vmatpush1.bf16.xpose.msra.mxu0 %v410_v13  ;;  %381 = vmatprep.subr.bf16.mxu1 %v439_v0 }
  0x1c   :  { %206 = vmatprep.subr.bf16.mxu0 %v411_v14 }
  0x22   :  { %382 = vmatpush3.bf16.xpose.msra.mxu1 %v413_v15 }
  0x23   :  { %207 = vmatpush1.bf16.xpose.msra.mxu0 %v414_v16  ;;  %383 = vmatprep.subr.bf16.mxu1 %v439_v0 }
  0x24   :  { %208 = vmatprep.subr.bf16.mxu0 %v415_v17 }
  0x2a   :  { %384 = vmatpush3.bf16.xpose.msra.mxu1 %v417_v18 }
  0x2b   :  { %209 = vmatpush1.bf16.xpose.msra.mxu0 %v418_v19  ;;  %385 = vmatprep.subr.bf16.mxu1 %v439_v0 }
  0x2c   :  { %210 = vmatprep.subr.bf16.mxu0 %v419_v20 }
  0x32   :  { %386 = vmatpush3.bf16.xpose.msra.mxu1 %v421_v21 }
  0x33   :  { %211 = vmatpush1.bf16.xpose.msra.mxu0 %v422_v22  ;;  %387 = vmatprep.subr.bf16.mxu1 %v439_v0 }
  0x34   :  { %212 = vmatprep.subr.bf16.mxu0 %v423_v23 }
  0x3a   :  { %388 = vmatpush3.bf16.xpose.msra.mxu1 %v425_v24 }
  0x3b   :  { %213 = vmatpush1.bf16.xpose.msra.mxu0 %v426_v25 }
  0x41   :  { %390 = vmatmul.mubr.bf16.vlgmr.msra.gmra.mxu1 %v430_v26 }
  0x42   :  { %231 = vmatmul.mubr.bf16.vlgmr.msra.gmra.mxu0 %v427_v27 }
 0x101   :  { %v273_v28 = vpop.f32.mrf.mxu1 }
 0x102   :  { %v232_v29 = vpop.f32.mrf.mxu0 }
 0x103   :  { %v274_v31 = vadd.f32 %v273_v28, %v232_v29  ;;  %v391_v32 = vpop.f32.mrf.mxu1 }
 0x104   :  { %v234_v33 = vpop.f32.mrf.mxu0 }
 0x105   :  { %v308_v34 = vadd.f32 %v361_v30, %v274_v31  ;;  %v276_v35 = vpop.f32.mrf.mxu1 }
 0x106   :  { %v235_v36 = vpop.f32.mrf.mxu0 }
 0x107   :  { %v362_v37 = vmul.f32 -1.442695, %v308_v34  ;;  %v277_v38 = vadd.f32 %v276_v35, %v235_v36  ;;  %v392_v39 = vpop.f32.mrf.mxu1 }
 0x108   :  { %v237_v40 = vpop.f32.mrf.mxu0 }
 0x109   :  { %431 = vpow2.f32 %v362_v37  ;;  %v309_v41 = vadd.f32 %v361_v30, %v277_v38 }
 0x10b   :  { %v363_v42 = vmul.f32 -1.442695, %v309_v41 }
 0x10d   :  { %433 = vpow2.f32 %v363_v42 }
 0x116   :  { %v432_v43 = vpop.eup %431 }
 0x117   :  { %v316_v44 = vadd.f32 1.0, %v432_v43 }
 0x119   :  { %435 = vrcp.f32 %v316_v44 }
 0x11a   :  { %v434_v45 = vpop.eup %433 }
 0x11b   :  { %v317_v46 = vadd.f32 1.0, %v434_v45 }
 0x11d   :  { %437 = vrcp.f32 %v317_v46 }
 0x126   :  { %v436_v47 = vpop.eup %435 }
 0x127   :  { %v322_v49 = vmul.f32 %v436_v47, %v308_v34 }
 0x129   :  { %v326_v50 = vadd.f32 %v324_v48, %v322_v49 }
 0x12a   :  { %v438_v51 = vpop.eup %437 }
 0x12b   :  { %328 = vst [vmem:[%s566_s4] sm:$0xff] %v326_v50  ;;  %v323_v53 = vmul.f32 %v438_v51, %v309_v41 }
 0x12d   :  { %v327_v54 = vadd.f32 %v325_v52, %v323_v53 }
 0x12f   :  { %329 = vst [vmem:[%s566_s4 + $0x8] sm:$0xff] %v327_v54 }

</bundles_post_ra>
